<compile_context>
chip_gen: v7x
topology: tpu7x:2x2x1
jax: 0.10.0
libtpu: 0.0.40
codegen_flags: <defaults>
</compile_context>

<pallas_src>
import jax
import jax.numpy as jnp
from jax import lax
from jax.experimental import pallas as pl
from jax.experimental.pallas import tpu as pltpu

VOCAB = 13
VOCAB_PAD = 16          # pad tiny contraction dim 13 -> 16
D_EMB = 2048
D1, D2, D3, D_OUT = 1024, 512, 256, 2
NOUT_PAD = 128          # pad 2-class output to one full lane (lane-dense store)
BN_EPS = 1e-5
TM_MAX = 128            # batch-tile rows per grid step


def _round_up(x, m):
    return (x + m - 1) // m * m


# --------------------------------------------------------------------------
# Kernel
# --------------------------------------------------------------------------
def _make_kernel(manual_w23_dma: bool):
    """manual_w23_dma=True (single-tile small-batch path): w2/w3 arrive as raw
    HBM refs (pl.ANY) and are DMA'd into VMEM scratch at kernel entry so the
    transfer overlaps the counts build and the layer-1 matmul."""

    def kernel(x_ref, w1_ref, s1_ref, t1_ref, w2_ref, s2_ref, t2_ref,
               w3_ref, s3_ref, t3_ref, w4_ref, b4_ref, o_ref, *scratch):
        if manual_w23_dma:
            w2_buf, w3_buf, sem = scratch
            cp2 = pltpu.make_async_copy(w2_ref, w2_buf, sem.at[0])
            cp3 = pltpu.make_async_copy(w3_ref, w3_buf, sem.at[1])
            cp2.start()
            cp3.start()

        # ---- counts[b, v] = #occurrences of token v in row b (f32, exact) ----
        x = x_ref[...]                                            # (TM, S) int32
        tm, seq = x.shape
        lane = lax.broadcasted_iota(jnp.int32, (tm, VOCAB_PAD), 1)
        counts = jnp.zeros((tm, VOCAB_PAD), jnp.float32)
        for s in range(seq):                                      # static unroll
            counts = counts + (lane == x[:, s:s + 1]).astype(jnp.float32)

        # ---- (embedding-sum . linear_1) fused: counts @ (emb @ W1), f32 ------
        h = jnp.dot(counts, w1_ref[...], preferred_element_type=jnp.float32)
        h = jnp.maximum(h * s1_ref[...] + t1_ref[...], 0.0)       # BN1 + ReLU

        # ---- linear_2 -> bn_2 -> relu (dropout = identity at inference) ------
        if manual_w23_dma:
            cp2.wait()
            w2 = w2_buf[...]
        else:
            w2 = w2_ref[...]
        h = jnp.dot(h.astype(jnp.bfloat16), w2, preferred_element_type=jnp.float32)
        h = jnp.maximum(h * s2_ref[...] + t2_ref[...], 0.0)

        # ---- linear_3 -> bn_3 -> relu -----------------------------------------
        if manual_w23_dma:
            cp3.wait()
            w3 = w3_buf[...]
        else:
            w3 = w3_ref[...]
        h = jnp.dot(h.astype(jnp.bfloat16), w3, preferred_element_type=jnp.float32)
        h = jnp.maximum(h * s3_ref[...] + t3_ref[...], 0.0)

        # ---- linear_4 (N padded 2 -> 128 for a lane-dense store) --------------
        logits = jnp.dot(h.astype(jnp.bfloat16), w4_ref[...],
                         preferred_element_type=jnp.float32) + b4_ref[...]

        # 2-class log_softmax via softplus (no cross-lane reductions):
        #   logp0 = -softplus(l1 - l0),  logp1 = -softplus(l0 - l1)
        l0 = logits[:, 0:1]
        l1 = logits[:, 1:2]

        def softplus(z):
            return jnp.maximum(z, 0.0) + jnp.log(1.0 + jnp.exp(-jnp.abs(z)))

        logp0 = -softplus(l1 - l0)
        logp1 = -softplus(l0 - l1)
        col = lax.broadcasted_iota(jnp.int32, logits.shape, 1)
        o_ref[...] = jnp.where(col == 0, logp0, jnp.where(col == 1, logp1, 0.0))

    return kernel


# --------------------------------------------------------------------------
# Host-side parameter preparation (one-time, outside the hot path)
# --------------------------------------------------------------------------
def _bn_scale_shift(b, bn):
    gamma, beta, mean, var = bn
    s = gamma * lax.rsqrt(var + BN_EPS)
    t = (b - mean) * s + beta
    return s[None, :].astype(jnp.float32), t[None, :].astype(jnp.float32)


def prepare_params(p):
    """Fuse embedding into linear_1 (f32), precompute BN scale/shift, cast the
    big weights to bf16 (scale applied in the f32 epilogue), pad w4/b4 to 128."""
    w1f = jnp.dot(p["emb"], p["w1"])                              # (13, 1024) f32
    w1f = jnp.pad(w1f, ((0, VOCAB_PAD - VOCAB), (0, 0))).astype(jnp.float32)
    s1, t1 = _bn_scale_shift(p["b1"], p["bn1"])
    s2, t2 = _bn_scale_shift(p["b2"], p["bn2"])
    s3, t3 = _bn_scale_shift(p["b3"], p["bn3"])
    w2 = p["w2"].astype(jnp.bfloat16)
    w3 = p["w3"].astype(jnp.bfloat16)
    w4 = jnp.pad(p["w4"], ((0, 0), (0, NOUT_PAD - D_OUT))).astype(jnp.bfloat16)
    b4 = jnp.pad(p["b4"], (0, NOUT_PAD - D_OUT))[None, :].astype(jnp.float32)
    return (w1f, s1, t1, w2, s2, t2, w3, s3, t3, w4, b4)


# --------------------------------------------------------------------------
# Forward
# --------------------------------------------------------------------------
@jax.jit
def chess_forward(x_idx, prepped):
    """x_idx: (B, S) int32 token indices in [0, VOCAB). Returns (B, 2) log-probs."""
    (w1f, s1, t1, w2, s2, t2, w3, s3, t3, w4, b4) = prepped
    B, S = x_idx.shape

    # Batch tiling: one tile (manual w2/w3 DMA overlap) when B <= 128, otherwise
    # a grid over M tiles with weights fetched once (constant index_maps).
    if B <= TM_MAX:
        tm = max(_round_up(B, 8), 8)
        b_pad = tm
    else:
        tm = TM_MAX
        b_pad = _round_up(B, tm)
    grid_m = b_pad // tm
    manual = grid_m == 1
    if b_pad != B:
        x_idx = jnp.pad(x_idx, ((0, b_pad - B), (0, 0)))          # pad rows: token 0

    def const_map(i):
        return (0, 0)

    def full_vmem(shape):
        return pl.BlockSpec(shape, const_map)

    if manual:
        w2_spec = pl.BlockSpec(memory_space=pl.ANY)
        w3_spec = pl.BlockSpec(memory_space=pl.ANY)
        scratch = [pltpu.VMEM((D1, D2), jnp.bfloat16),
                   pltpu.VMEM((D2, D3), jnp.bfloat16),
                   pltpu.SemaphoreType.DMA((2,))]
        dim_sem = ("arbitrary",)
    else:
        w2_spec = full_vmem((D1, D2))
        w3_spec = full_vmem((D2, D3))
        scratch = []
        dim_sem = ("parallel",)        # v7x: split M tiles across both TensorCores

    in_specs = [
        pl.BlockSpec((tm, S), lambda i: (i, 0)),                  # token ids
        full_vmem((VOCAB_PAD, D1)),                               # fused emb@w1 (f32)
        full_vmem((1, D1)), full_vmem((1, D1)),                   # s1, t1
        w2_spec,
        full_vmem((1, D2)), full_vmem((1, D2)),                   # s2, t2
        w3_spec,
        full_vmem((1, D3)), full_vmem((1, D3)),                   # s3, t3
        full_vmem((D3, NOUT_PAD)),                                # w4 padded
        full_vmem((1, NOUT_PAD)),                                 # b4 padded
    ]
    out_spec = pl.BlockSpec((tm, NOUT_PAD), lambda i: (i, 0))

    out = pl.pallas_call(
        _make_kernel(manual),
        out_shape=jax.ShapeDtypeStruct((b_pad, NOUT_PAD), jnp.float32),
        grid=(grid_m,),
        in_specs=in_specs,
        out_specs=out_spec,
        scratch_shapes=scratch,
        compiler_params=pltpu.CompilerParams(
            dimension_semantics=dim_sem,
            vmem_limit_bytes=16 << 20),
    )(x_idx, w1f, s1, t1, w2, s2, t2, w3, s3, t3, w4, b4)

    return out[:B, :D_OUT]


# --------------------------------------------------------------------------
# Synthetic parameters (mirror PyTorch default inits, inference mode)
# --------------------------------------------------------------------------
def init_params(key):
    ks = jax.random.split(key, 9)

    def linear(kw, kb, fan_in, fan_out):
        bound = 1.0 / jnp.sqrt(jnp.float32(fan_in))
        # stored as (in, out): transpose of PyTorch's (out, in)
        w = jax.random.uniform(kw, (fan_in, fan_out), jnp.float32, -bound, bound)
        b = jax.random.uniform(kb, (fan_out,), jnp.float32, -bound, bound)
        return w, b

    def bn(n):  # (gamma, beta, running_mean, running_var) — fresh-module values
        return (jnp.ones((n,), jnp.float32), jnp.zeros((n,), jnp.float32),
                jnp.zeros((n,), jnp.float32), jnp.ones((n,), jnp.float32))

    emb = jax.random.normal(ks[0], (VOCAB, D_EMB), jnp.float32)   # nn.Embedding ~ N(0,1)
    w1, b1 = linear(ks[1], ks[2], D_EMB, D1)
    w2, b2 = linear(ks[3], ks[4], D1, D2)
    w3, b3 = linear(ks[5], ks[6], D2, D3)
    w4, b4 = linear(ks[7], ks[8], D3, D_OUT)
    return dict(emb=emb, w1=w1, b1=b1, bn1=bn(D1), w2=w2, b2=b2, bn2=bn(D2),
                w3=w3, b3=b3, bn3=bn(D3), w4=w4, b4=b4)


# --------------------------------------------------------------------------
# References
# --------------------------------------------------------------------------
def _reference_f32(x_idx, p):
    """Full-precision pure-JAX reference (inference semantics of the module)."""
    def bn_apply(x, bn):
        gamma, beta, mean, var = bn
        return (x - mean) * gamma / jnp.sqrt(var + BN_EPS) + beta
    h = p["emb"][x_idx].sum(axis=1)
    h = jax.nn.relu(bn_apply(h @ p["w1"] + p["b1"], p["bn1"]))
    h = jax.nn.relu(bn_apply(h @ p["w2"] + p["b2"], p["bn2"]))
    h = jax.nn.relu(bn_apply(h @ p["w3"] + p["b3"], p["bn3"]))
    logits = h @ p["w4"] + p["b4"]
    return jax.nn.log_softmax(logits, axis=1)


def _reference_prepared(x_idx, prepped):
    """Pure-JAX reference using the SAME folded/bf16 params (tight kernel check)."""
    (w1f, s1, t1, w2, s2, t2, w3, s3, t3, w4, b4) = prepped
    counts = jax.nn.one_hot(x_idx, VOCAB_PAD, dtype=jnp.float32).sum(axis=1)
    h = jnp.dot(counts, w1f, preferred_element_type=jnp.float32)
    h = jnp.maximum(h * s1 + t1, 0.0)
    h = jnp.dot(h.astype(jnp.bfloat16), w2, preferred_element_type=jnp.float32)
    h = jnp.maximum(h * s2 + t2, 0.0)
    h = jnp.dot(h.astype(jnp.bfloat16), w3, preferred_element_type=jnp.float32)
    h = jnp.maximum(h * s3 + t3, 0.0)
    logits = jnp.dot(h.astype(jnp.bfloat16), w4,
                     preferred_element_type=jnp.float32) + b4
    return jax.nn.log_softmax(logits[:, :D_OUT], axis=1)


# --------------------------------------------------------------------------
if __name__ == "__main__":
    key = jax.random.PRNGKey(0)
    k_params, k_x1, k_x2 = jax.random.split(key, 3)

    params = init_params(k_params)
    prepped = prepare_params(params)

    # ---- small batch: single-tile path with manual w2/w3 DMA overlap --------
    B1, S = 8, 8
    x1 = jax.random.randint(k_x1, (B1, S), 0, VOCAB, dtype=jnp.int32)
    out1 = jax.block_until_ready(chess_forward(x1, prepped))
    assert out1.shape == (B1, D_OUT)
    assert jnp.allclose(out1, _reference_prepared(x1, prepped),
                        atol=2e-3, rtol=2e-3), "kernel vs prepared ref (B=8)"
    assert jnp.allclose(out1, _reference_f32(x1, params),
                        atol=2e-2, rtol=2e-2), "kernel vs f32 ref (B=8)"

    # ---- larger batch: M-tiled grid path, weights fetched once --------------
    B2 = 200
    x2 = jax.random.randint(k_x2, (B2, S), 0, VOCAB, dtype=jnp.int32)
    out2 = jax.block_until_ready(chess_forward(x2, prepped))
    assert out2.shape == (B2, D_OUT)
    assert jnp.allclose(out2, _reference_prepared(x2, prepped),
                        atol=2e-3, rtol=2e-3), "kernel vs prepared ref (B=200)"
    assert jnp.allclose(out2, _reference_f32(x2, params),
                        atol=2e-2, rtol=2e-2), "kernel vs f32 ref (B=200)"

    print("KERNEL_OK")
</pallas_src>

<mosaic_0001>
module attributes {stable_mosaic.version = 11 : i64} {
  func.func @kernel(%arg0: i32, %arg1: memref<8x8xi32, #tpu.memory_space<vmem>>, %arg2: memref<16x1024xf32, #tpu.memory_space<vmem>>, %arg3: memref<1x1024xf32, #tpu.memory_space<vmem>>, %arg4: memref<1x1024xf32, #tpu.memory_space<vmem>>, %arg5: memref<1024x512xbf16, #tpu.memory_space<any>>, %arg6: memref<1x512xf32, #tpu.memory_space<vmem>>, %arg7: memref<1x512xf32, #tpu.memory_space<vmem>>, %arg8: memref<512x256xbf16, #tpu.memory_space<any>>, %arg9: memref<1x256xf32, #tpu.memory_space<vmem>>, %arg10: memref<1x256xf32, #tpu.memory_space<vmem>>, %arg11: memref<256x128xbf16, #tpu.memory_space<vmem>>, %arg12: memref<1x128xf32, #tpu.memory_space<vmem>>, %arg13: memref<8x128xf32, #tpu.memory_space<vmem>>, %arg14: memref<1024x512xbf16, #tpu.memory_space<vmem>>, %arg15: memref<512x256xbf16, #tpu.memory_space<vmem>>, %arg16: memref<2x!tpu.dma_semaphore, #tpu.memory_space<semaphore_mem>>) attributes {dimension_semantics = [#tpu.dimension_semantics<arbitrary>], iteration_bounds = array<i64: 1>, scalar_prefetch = 0 : i64, scratch_operands = 3 : i64, tpu.core_type = #tpu.core_type<tc>, window_params = [{transform_indices = @transform_0, window_bounds = array<i64: 8, 8>}, {pipeline_mode = #tpu.pipeline_mode<synchronous>, transform_indices = @transform_1, window_bounds = array<i64: 16, 1024>}, {pipeline_mode = #tpu.pipeline_mode<synchronous>, transform_indices = @transform_2, window_bounds = array<i64: 1, 1024>}, {pipeline_mode = #tpu.pipeline_mode<synchronous>, transform_indices = @transform_3, window_bounds = array<i64: 1, 1024>}, {}, {pipeline_mode = #tpu.pipeline_mode<synchronous>, transform_indices = @transform_5, window_bounds = array<i64: 1, 512>}, {pipeline_mode = #tpu.pipeline_mode<synchronous>, transform_indices = @transform_6, window_bounds = array<i64: 1, 512>}, {}, {pipeline_mode = #tpu.pipeline_mode<synchronous>, transform_indices = @transform_8, window_bounds = array<i64: 1, 256>}, {pipeline_mode = #tpu.pipeline_mode<synchronous>, transform_indices = @transform_9, window_bounds = array<i64: 1, 256>}, {pipeline_mode = #tpu.pipeline_mode<synchronous>, transform_indices = @transform_10, window_bounds = array<i64: 256, 128>}, {pipeline_mode = #tpu.pipeline_mode<synchronous>, transform_indices = @transform_11, window_bounds = array<i64: 1, 128>}, {transform_indices = @transform_12, window_bounds = array<i64: 8, 128>}]} {
    %c0_i32 = arith.constant 0 : i32
    %0 = tpu.memref_slice %arg16[%c0_i32] : memref<2x!tpu.dma_semaphore, #tpu.memory_space<semaphore_mem>> -> memref<1x!tpu.dma_semaphore, #tpu.memory_space<semaphore_mem>>
    %1 = tpu.memref_squeeze %0 : memref<1x!tpu.dma_semaphore, #tpu.memory_space<semaphore_mem>> -> memref<!tpu.dma_semaphore, #tpu.memory_space<semaphore_mem>>
    tpu.enqueue_dma source(%arg5 : memref<1024x512xbf16, #tpu.memory_space<any>>) target(%arg14 : memref<1024x512xbf16, #tpu.memory_space<vmem>>) target_semaphore(%1 : memref<!tpu.dma_semaphore, #tpu.memory_space<semaphore_mem>>)
    %c1_i32 = arith.constant 1 : i32
    %2 = tpu.memref_slice %arg16[%c1_i32] : memref<2x!tpu.dma_semaphore, #tpu.memory_space<semaphore_mem>> -> memref<1x!tpu.dma_semaphore, #tpu.memory_space<semaphore_mem>>
    %3 = tpu.memref_squeeze %2 : memref<1x!tpu.dma_semaphore, #tpu.memory_space<semaphore_mem>> -> memref<!tpu.dma_semaphore, #tpu.memory_space<semaphore_mem>>
    tpu.enqueue_dma source(%arg8 : memref<512x256xbf16, #tpu.memory_space<any>>) target(%arg15 : memref<512x256xbf16, #tpu.memory_space<vmem>>) target_semaphore(%3 : memref<!tpu.dma_semaphore, #tpu.memory_space<semaphore_mem>>)
    %c0 = arith.constant 0 : index
    %c0_0 = arith.constant 0 : index
    %4 = vector.load %arg1[%c0, %c0_0] : memref<8x8xi32, #tpu.memory_space<vmem>>, vector<8x8xi32>
    %5 = tpu.iota {dimensions = array<i32: 1>} : vector<8x16xi32>
    %cst = arith.constant 0.000000e+00 : f32
    %6 = vector.broadcast %cst : f32 to vector<8x16xf32>
    %7 = vector.extract_strided_slice %4 {offsets = [0, 0], sizes = [8, 1], strides = [1, 1]} : vector<8x8xi32> to vector<8x1xi32>
    %8 = vector.broadcast %7 : vector<8x1xi32> to vector<8x16xi32>
    %9 = arith.cmpi eq, %5, %8 : vector<8x16xi32>
    %10 = arith.extui %9 : vector<8x16xi1> to vector<8x16xi32>
    %11 = arith.sitofp %10 : vector<8x16xi32> to vector<8x16xf32>
    %12 = arith.addf %6, %11 : vector<8x16xf32>
    %13 = vector.extract_strided_slice %4 {offsets = [0, 1], sizes = [8, 1], strides = [1, 1]} : vector<8x8xi32> to vector<8x1xi32>
    %14 = vector.broadcast %13 : vector<8x1xi32> to vector<8x16xi32>
    %15 = arith.cmpi eq, %5, %14 : vector<8x16xi32>
    %16 = arith.extui %15 : vector<8x16xi1> to vector<8x16xi32>
    %17 = arith.sitofp %16 : vector<8x16xi32> to vector<8x16xf32>
    %18 = arith.addf %12, %17 : vector<8x16xf32>
    %19 = vector.extract_strided_slice %4 {offsets = [0, 2], sizes = [8, 1], strides = [1, 1]} : vector<8x8xi32> to vector<8x1xi32>
    %20 = vector.broadcast %19 : vector<8x1xi32> to vector<8x16xi32>
    %21 = arith.cmpi eq, %5, %20 : vector<8x16xi32>
    %22 = arith.extui %21 : vector<8x16xi1> to vector<8x16xi32>
    %23 = arith.sitofp %22 : vector<8x16xi32> to vector<8x16xf32>
    %24 = arith.addf %18, %23 : vector<8x16xf32>
    %25 = vector.extract_strided_slice %4 {offsets = [0, 3], sizes = [8, 1], strides = [1, 1]} : vector<8x8xi32> to vector<8x1xi32>
    %26 = vector.broadcast %25 : vector<8x1xi32> to vector<8x16xi32>
    %27 = arith.cmpi eq, %5, %26 : vector<8x16xi32>
    %28 = arith.extui %27 : vector<8x16xi1> to vector<8x16xi32>
    %29 = arith.sitofp %28 : vector<8x16xi32> to vector<8x16xf32>
    %30 = arith.addf %24, %29 : vector<8x16xf32>
    %31 = vector.extract_strided_slice %4 {offsets = [0, 4], sizes = [8, 1], strides = [1, 1]} : vector<8x8xi32> to vector<8x1xi32>
    %32 = vector.broadcast %31 : vector<8x1xi32> to vector<8x16xi32>
    %33 = arith.cmpi eq, %5, %32 : vector<8x16xi32>
    %34 = arith.extui %33 : vector<8x16xi1> to vector<8x16xi32>
    %35 = arith.sitofp %34 : vector<8x16xi32> to vector<8x16xf32>
    %36 = arith.addf %30, %35 : vector<8x16xf32>
    %37 = vector.extract_strided_slice %4 {offsets = [0, 5], sizes = [8, 1], strides = [1, 1]} : vector<8x8xi32> to vector<8x1xi32>
    %38 = vector.broadcast %37 : vector<8x1xi32> to vector<8x16xi32>
    %39 = arith.cmpi eq, %5, %38 : vector<8x16xi32>
    %40 = arith.extui %39 : vector<8x16xi1> to vector<8x16xi32>
    %41 = arith.sitofp %40 : vector<8x16xi32> to vector<8x16xf32>
    %42 = arith.addf %36, %41 : vector<8x16xf32>
    %43 = vector.extract_strided_slice %4 {offsets = [0, 6], sizes = [8, 1], strides = [1, 1]} : vector<8x8xi32> to vector<8x1xi32>
    %44 = vector.broadcast %43 : vector<8x1xi32> to vector<8x16xi32>
    %45 = arith.cmpi eq, %5, %44 : vector<8x16xi32>
    %46 = arith.extui %45 : vector<8x16xi1> to vector<8x16xi32>
    %47 = arith.sitofp %46 : vector<8x16xi32> to vector<8x16xf32>
    %48 = arith.addf %42, %47 : vector<8x16xf32>
    %49 = vector.extract_strided_slice %4 {offsets = [0, 7], sizes = [8, 1], strides = [1, 1]} : vector<8x8xi32> to vector<8x1xi32>
    %50 = vector.broadcast %49 : vector<8x1xi32> to vector<8x16xi32>
    %51 = arith.cmpi eq, %5, %50 : vector<8x16xi32>
    %52 = arith.extui %51 : vector<8x16xi1> to vector<8x16xi32>
    %53 = arith.sitofp %52 : vector<8x16xi32> to vector<8x16xf32>
    %54 = arith.addf %48, %53 : vector<8x16xf32>
    %c0_1 = arith.constant 0 : index
    %c0_2 = arith.constant 0 : index
    %55 = vector.load %arg2[%c0_1, %c0_2] : memref<16x1024xf32, #tpu.memory_space<vmem>>, vector<16x1024xf32>
    %cst_3 = arith.constant dense<0.000000e+00> : vector<8x1024xf32>
    %56 = tpu.matmul %54, %55, %cst_3 {dimension_numbers = #tpu.dot_dimension_numbers<[1], [0], [0], [1], [0, 0, 1, 1], [], []>} : vector<8x16xf32>, vector<16x1024xf32>, vector<8x1024xf32> -> vector<8x1024xf32>
    %c0_4 = arith.constant 0 : index
    %c0_5 = arith.constant 0 : index
    %57 = vector.load %arg3[%c0_4, %c0_5] : memref<1x1024xf32, #tpu.memory_space<vmem>>, vector<1x1024xf32>
    %58 = vector.broadcast %57 : vector<1x1024xf32> to vector<8x1024xf32>
    %59 = arith.mulf %56, %58 : vector<8x1024xf32>
    %c0_6 = arith.constant 0 : index
    %c0_7 = arith.constant 0 : index
    %60 = vector.load %arg4[%c0_6, %c0_7] : memref<1x1024xf32, #tpu.memory_space<vmem>>, vector<1x1024xf32>
    %61 = vector.broadcast %60 : vector<1x1024xf32> to vector<8x1024xf32>
    %62 = arith.addf %59, %61 : vector<8x1024xf32>
    %cst_8 = arith.constant 0.000000e+00 : f32
    %63 = vector.broadcast %cst_8 : f32 to vector<8x1024xf32>
    %64 = arith.maximumf %62, %63 : vector<8x1024xf32>
    %c0_i32_9 = arith.constant 0 : i32
    %65 = tpu.memref_slice %arg16[%c0_i32_9] : memref<2x!tpu.dma_semaphore, #tpu.memory_space<semaphore_mem>> -> memref<1x!tpu.dma_semaphore, #tpu.memory_space<semaphore_mem>>
    %66 = tpu.memref_squeeze %65 : memref<1x!tpu.dma_semaphore, #tpu.memory_space<semaphore_mem>> -> memref<!tpu.dma_semaphore, #tpu.memory_space<semaphore_mem>>
    tpu.wait_dma2 semaphore(%66 : memref<!tpu.dma_semaphore, #tpu.memory_space<semaphore_mem>>) src(%arg5 : memref<1024x512xbf16, #tpu.memory_space<any>>) dst(%arg14 : memref<1024x512xbf16, #tpu.memory_space<vmem>>)
    %c0_10 = arith.constant 0 : index
    %c0_11 = arith.constant 0 : index
    %67 = vector.load %arg14[%c0_10, %c0_11] : memref<1024x512xbf16, #tpu.memory_space<vmem>>, vector<1024x512xbf16>
    %68 = arith.truncf %64 : vector<8x1024xf32> to vector<8x1024xbf16>
    %cst_12 = arith.constant dense<0.000000e+00> : vector<8x512xf32>
    %69 = tpu.matmul %68, %67, %cst_12 {dimension_numbers = #tpu.dot_dimension_numbers<[1], [0], [0], [1], [0, 0, 1, 1], [], []>} : vector<8x1024xbf16>, vector<1024x512xbf16>, vector<8x512xf32> -> vector<8x512xf32>
    %c0_13 = arith.constant 0 : index
    %c0_14 = arith.constant 0 : index
    %70 = vector.load %arg6[%c0_13, %c0_14] : memref<1x512xf32, #tpu.memory_space<vmem>>, vector<1x512xf32>
    %71 = vector.broadcast %70 : vector<1x512xf32> to vector<8x512xf32>
    %72 = arith.mulf %69, %71 : vector<8x512xf32>
    %c0_15 = arith.constant 0 : index
    %c0_16 = arith.constant 0 : index
    %73 = vector.load %arg7[%c0_15, %c0_16] : memref<1x512xf32, #tpu.memory_space<vmem>>, vector<1x512xf32>
    %74 = vector.broadcast %73 : vector<1x512xf32> to vector<8x512xf32>
    %75 = arith.addf %72, %74 : vector<8x512xf32>
    %cst_17 = arith.constant 0.000000e+00 : f32
    %76 = vector.broadcast %cst_17 : f32 to vector<8x512xf32>
    %77 = arith.maximumf %75, %76 : vector<8x512xf32>
    %c1_i32_18 = arith.constant 1 : i32
    %78 = tpu.memref_slice %arg16[%c1_i32_18] : memref<2x!tpu.dma_semaphore, #tpu.memory_space<semaphore_mem>> -> memref<1x!tpu.dma_semaphore, #tpu.memory_space<semaphore_mem>>
    %79 = tpu.memref_squeeze %78 : memref<1x!tpu.dma_semaphore, #tpu.memory_space<semaphore_mem>> -> memref<!tpu.dma_semaphore, #tpu.memory_space<semaphore_mem>>
    tpu.wait_dma2 semaphore(%79 : memref<!tpu.dma_semaphore, #tpu.memory_space<semaphore_mem>>) src(%arg8 : memref<512x256xbf16, #tpu.memory_space<any>>) dst(%arg15 : memref<512x256xbf16, #tpu.memory_space<vmem>>)
    %c0_19 = arith.constant 0 : index
    %c0_20 = arith.constant 0 : index
    %80 = vector.load %arg15[%c0_19, %c0_20] : memref<512x256xbf16, #tpu.memory_space<vmem>>, vector<512x256xbf16>
    %81 = arith.truncf %77 : vector<8x512xf32> to vector<8x512xbf16>
    %cst_21 = arith.constant dense<0.000000e+00> : vector<8x256xf32>
    %82 = tpu.matmul %81, %80, %cst_21 {dimension_numbers = #tpu.dot_dimension_numbers<[1], [0], [0], [1], [0, 0, 1, 1], [], []>} : vector<8x512xbf16>, vector<512x256xbf16>, vector<8x256xf32> -> vector<8x256xf32>
    %c0_22 = arith.constant 0 : index
    %c0_23 = arith.constant 0 : index
    %83 = vector.load %arg9[%c0_22, %c0_23] : memref<1x256xf32, #tpu.memory_space<vmem>>, vector<1x256xf32>
    %84 = vector.broadcast %83 : vector<1x256xf32> to vector<8x256xf32>
    %85 = arith.mulf %82, %84 : vector<8x256xf32>
    %c0_24 = arith.constant 0 : index
    %c0_25 = arith.constant 0 : index
    %86 = vector.load %arg10[%c0_24, %c0_25] : memref<1x256xf32, #tpu.memory_space<vmem>>, vector<1x256xf32>
    %87 = vector.broadcast %86 : vector<1x256xf32> to vector<8x256xf32>
    %88 = arith.addf %85, %87 : vector<8x256xf32>
    %cst_26 = arith.constant 0.000000e+00 : f32
    %89 = vector.broadcast %cst_26 : f32 to vector<8x256xf32>
    %90 = arith.maximumf %88, %89 : vector<8x256xf32>
    %91 = arith.truncf %90 : vector<8x256xf32> to vector<8x256xbf16>
    %c0_27 = arith.constant 0 : index
    %c0_28 = arith.constant 0 : index
    %92 = vector.load %arg11[%c0_27, %c0_28] : memref<256x128xbf16, #tpu.memory_space<vmem>>, vector<256x128xbf16>
    %cst_29 = arith.constant dense<0.000000e+00> : vector<8x128xf32>
    %93 = tpu.matmul %91, %92, %cst_29 {dimension_numbers = #tpu.dot_dimension_numbers<[1], [0], [0], [1], [0, 0, 1, 1], [], []>} : vector<8x256xbf16>, vector<256x128xbf16>, vector<8x128xf32> -> vector<8x128xf32>
    %c0_30 = arith.constant 0 : index
    %c0_31 = arith.constant 0 : index
    %94 = vector.load %arg12[%c0_30, %c0_31] : memref<1x128xf32, #tpu.memory_space<vmem>>, vector<1x128xf32>
    %95 = vector.broadcast %94 : vector<1x128xf32> to vector<8x128xf32>
    %96 = arith.addf %93, %95 : vector<8x128xf32>
    %97 = vector.extract_strided_slice %96 {offsets = [0, 0], sizes = [8, 1], strides = [1, 1]} : vector<8x128xf32> to vector<8x1xf32>
    %98 = vector.extract_strided_slice %96 {offsets = [0, 1], sizes = [8, 1], strides = [1, 1]} : vector<8x128xf32> to vector<8x1xf32>
    %99 = arith.subf %98, %97 : vector<8x1xf32>
    %cst_32 = arith.constant 0.000000e+00 : f32
    %100 = vector.broadcast %cst_32 : f32 to vector<8x1xf32>
    %101 = arith.maximumf %99, %100 : vector<8x1xf32>
    %102 = math.absf %99 : vector<8x1xf32>
    %cst_33 = arith.constant 0.000000e+00 : f32
    %103 = vector.broadcast %cst_33 : f32 to vector<8x1xf32>
    %104 = arith.subf %103, %102 : vector<8x1xf32>
    %105 = math.exp %104 : vector<8x1xf32>
    %cst_34 = arith.constant 1.000000e+00 : f32
    %106 = vector.broadcast %cst_34 : f32 to vector<8x1xf32>
    %107 = arith.addf %106, %105 : vector<8x1xf32>
    %108 = math.log %107 : vector<8x1xf32>
    %109 = arith.addf %101, %108 : vector<8x1xf32>
    %cst_35 = arith.constant 0.000000e+00 : f32
    %110 = vector.broadcast %cst_35 : f32 to vector<8x1xf32>
    %111 = arith.subf %110, %109 : vector<8x1xf32>
    %112 = arith.subf %97, %98 : vector<8x1xf32>
    %cst_36 = arith.constant 0.000000e+00 : f32
    %113 = vector.broadcast %cst_36 : f32 to vector<8x1xf32>
    %114 = arith.maximumf %112, %113 : vector<8x1xf32>
    %115 = math.absf %112 : vector<8x1xf32>
    %cst_37 = arith.constant 0.000000e+00 : f32
    %116 = vector.broadcast %cst_37 : f32 to vector<8x1xf32>
    %117 = arith.subf %116, %115 : vector<8x1xf32>
    %118 = math.exp %117 : vector<8x1xf32>
    %cst_38 = arith.constant 1.000000e+00 : f32
    %119 = vector.broadcast %cst_38 : f32 to vector<8x1xf32>
    %120 = arith.addf %119, %118 : vector<8x1xf32>
    %121 = math.log %120 : vector<8x1xf32>
    %122 = arith.addf %114, %121 : vector<8x1xf32>
    %cst_39 = arith.constant 0.000000e+00 : f32
    %123 = vector.broadcast %cst_39 : f32 to vector<8x1xf32>
    %124 = arith.subf %123, %122 : vector<8x1xf32>
    %125 = tpu.iota {dimensions = array<i32: 1>} : vector<8x128xi32>
    %c0_i32_40 = arith.constant 0 : i32
    %126 = vector.broadcast %c0_i32_40 : i32 to vector<8x128xi32>
    %127 = arith.cmpi eq, %125, %126 : vector<8x128xi32>
    %c1_i32_41 = arith.constant 1 : i32
    %128 = vector.broadcast %c1_i32_41 : i32 to vector<8x128xi32>
    %129 = arith.cmpi eq, %125, %128 : vector<8x128xi32>
    %cst_42 = arith.constant 0.000000e+00 : f32
    %130 = vector.shape_cast %124 : vector<8x1xf32> to vector<8x1xf32>
    %131 = vector.broadcast %130 : vector<8x1xf32> to vector<8x128xf32>
    %132 = vector.broadcast %cst_42 : f32 to vector<8x128xf32>
    %133 = arith.select %129, %131, %132 : vector<8x128xi1>, vector<8x128xf32>
    %134 = vector.shape_cast %111 : vector<8x1xf32> to vector<8x1xf32>
    %135 = vector.broadcast %134 : vector<8x1xf32> to vector<8x128xf32>
    %136 = arith.select %127, %135, %133 : vector<8x128xi1>, vector<8x128xf32>
    %c0_43 = arith.constant 0 : index
    %c0_44 = arith.constant 0 : index
    %137 = vector.load %arg13[%c0_43, %c0_44] : memref<8x128xf32, #tpu.memory_space<vmem>>, vector<8x128xf32>
    tpu.vector_store %arg13[%c0_43, %c0_44], %136 {strides = array<i32>} : memref<8x128xf32, #tpu.memory_space<vmem>>, vector<8x128xf32>,
    return
  }
  func.func @transform_0(%arg0: i32) -> (i32, i32) {
    %c0_i32 = arith.constant 0 : i32
    %c0_i32_0 = arith.constant 0 : i32
    return %arg0, %c0_i32 : i32, i32
  }
  func.func @transform_1(%arg0: i32) -> (i32, i32) {
    %c0_i32 = arith.constant 0 : i32
    %c0_i32_0 = arith.constant 0 : i32
    %c0_i32_1 = arith.constant 0 : i32
    return %c0_i32, %c0_i32_0 : i32, i32
  }
  func.func @transform_2(%arg0: i32) -> (i32, i32) {
    %c0_i32 = arith.constant 0 : i32
    %c0_i32_0 = arith.constant 0 : i32
    %c0_i32_1 = arith.constant 0 : i32
    return %c0_i32, %c0_i32_0 : i32, i32
  }
  func.func @transform_3(%arg0: i32) -> (i32, i32) {
    %c0_i32 = arith.constant 0 : i32
    %c0_i32_0 = arith.constant 0 : i32
    %c0_i32_1 = arith.constant 0 : i32
    return %c0_i32, %c0_i32_0 : i32, i32
  }
  func.func @transform_5(%arg0: i32) -> (i32, i32) {
    %c0_i32 = arith.constant 0 : i32
    %c0_i32_0 = arith.constant 0 : i32
    %c0_i32_1 = arith.constant 0 : i32
    return %c0_i32, %c0_i32_0 : i32, i32
  }
  func.func @transform_6(%arg0: i32) -> (i32, i32) {
    %c0_i32 = arith.constant 0 : i32
    %c0_i32_0 = arith.constant 0 : i32
    %c0_i32_1 = arith.constant 0 : i32
    return %c0_i32, %c0_i32_0 : i32, i32
  }
  func.func @transform_8(%arg0: i32) -> (i32, i32) {
    %c0_i32 = arith.constant 0 : i32
    %c0_i32_0 = arith.constant 0 : i32
    %c0_i32_1 = arith.constant 0 : i32
    return %c0_i32, %c0_i32_0 : i32, i32
  }
  func.func @transform_9(%arg0: i32) -> (i32, i32) {
    %c0_i32 = arith.constant 0 : i32
    %c0_i32_0 = arith.constant 0 : i32
    %c0_i32_1 = arith.constant 0 : i32
    return %c0_i32, %c0_i32_0 : i32, i32
  }
  func.func @transform_10(%arg0: i32) -> (i32, i32) {
    %c0_i32 = arith.constant 0 : i32
    %c0_i32_0 = arith.constant 0 : i32
    %c0_i32_1 = arith.constant 0 : i32
    return %c0_i32, %c0_i32_0 : i32, i32
  }
  func.func @transform_11(%arg0: i32) -> (i32, i32) {
    %c0_i32 = arith.constant 0 : i32
    %c0_i32_0 = arith.constant 0 : i32
    %c0_i32_1 = arith.constant 0 : i32
    return %c0_i32, %c0_i32_0 : i32, i32
  }
  func.func @transform_12(%arg0: i32) -> (i32, i32) {
    %c0_i32 = arith.constant 0 : i32
    %c0_i32_0 = arith.constant 0 : i32
    return %arg0, %c0_i32 : i32, i32
  }
}

</mosaic_0001>

<bundles_post_ra>
// kernel: chess_forward.1
= control target key start
LH: loop header
LB: loop body
LE: loop exit
PB: predicated region body
PF: predicated region fallthrough
CT: control target
= control target key end

     0   :  { %17 = vsyncpa [#allocation6], 0  ;;  %s2294_s0 = inlined_call_operand.hbm [shape: s32[8,8], index: 0, kind: input, shape index: {}]   ;;  %s2295_s1 = inlined_call_operand.hbm [shape: f32[16,1024], index: 1, kind: input, shape index: {}]   ;;  %s2296_s2 = inlined_call_operand.hbm [shape: f32[1,1024], index: 2, kind: input, shape index: {}]   ;;  %s2297_s3 = inlined_call_operand.vmem [shape: f32[1,1024], index: 3, kind: input, shape index: {}]   ;;  %s2298_s4 = inlined_call_operand.hbm [shape: bf16[1024,512], index: 4, kind: input, shape index: {}]   ;;  %s2299_s5 = inlined_call_operand.vmem [shape: f32[1,512], index: 5, kind: input, shape index: {}]   ;;  %s2300_s6 = inlined_call_operand.vmem [shape: f32[1,512], index: 6, kind: input, shape index: {}]   ;;  %s2301_s7 = inlined_call_operand.hbm [shape: bf16[512,256], index: 7, kind: input, shape index: {}]   ;;  %s2302_s8 = inlined_call_operand.vmem [shape: f32[1,256], index: 8, kind: input, shape index: {}]   ;;  %s2303_s9 = inlined_call_operand.vmem [shape: f32[1,256], index: 9, kind: input, shape index: {}]   ;;  %s2304_s10 = inlined_call_operand.hbm [shape: bf16[256,128], index: 10, kind: input, shape index: {}]   ;;  %s2305_s11 = inlined_call_operand.vmem [shape: f32[1,128], index: 11, kind: input, shape index: {}]   ;;  %s2306_s12 = inlined_call_operand.vmem [shape: f32[8,128], index: 12, kind: output, shape index: {}]  }
   0x1   :  { %18 = vsyncpa [#allocation8], 0 }
   0x2   :  { %19 = vsyncpa [#allocation11], 0  ;;  %s1968_s21 = smov [#allocation7]   ;;  %s1870_s25 = scalar_lea.hbm %s2295_s1, 2048 }
   0x3   :  { %s35_s22 = sshll.u32 %s1968_s21, 4  ;;  %p1871_p0 = scmp.ne.s32.totalorder %s2295_s1, %s1870_s25  ;;  %s36_s22 = int_to_ptr.vmem [resolvable:$true] %s35_s22 }
   0x4   :  { %p1874_p1 = scmp.lt.u32.totalorder %s1870_s25, %s2295_s1 }
   0x6   :  { %p1876_p2 = pnand %p1874_p1, %p1871_p0 }
   0x8   :  { %1879 = shalt.err (!%p1876_p2)
}
   0x9   :  { %s1880_s30 = scalar_lea.vmem %s36_s22, 2048  ;;  %p1885_p4 = scmp.lt.s32.totalorder %s36_s22, %s36_s22 }
   0xa   :  { %p1881_p3 = scmp.ne.s32.totalorder %s36_s22, %s1880_s30  ;;  %p1886_p5 = scmp.lt.s32.totalorder %s1880_s30, %s1880_s30 }
   0xc   :  { %p1887_p6 = por %p1886_p5, %p1885_p4 }
   0xe   :  { %p1888_p7 = pnand %p1887_p6, %p1881_p3 }
  0x10   :  { %1891 = shalt.err (!%p1888_p7)
}
  0x11   :  { %s1969_s13 = smov 1024   ;;  %s1970_s14 = smov 64  }
  0x12   :  { %41 = dma.hbm_to_vmem [thread:$0]  %s2295_s1, 2048, %s36_s22, [#allocation8], %s1969_s13, %s1969_s13, %s1970_s14  }
  0x13   :  { %s1971_s17 = smov [#allocation5]   ;;  %s1972_s19 = smov [#allocation9]  }
  0x14   :  { %s26_s18 = sshll.u32 %s1971_s17, 4  ;;  %s48_s20 = sshll.u32 %s1972_s19, 4  ;;  %s27_s18 = int_to_ptr.vmem [resolvable:$true] %s26_s18  ;;  %s49_s20 = int_to_ptr.vmem [resolvable:$true] %s48_s20 }
  0x15   :  { %s1892_s24 = scalar_lea.hbm %s2294_s0, 128 }
  0x16   :  { %p1893_p8 = scmp.ne.s32.totalorder %s2294_s0, %s1892_s24  ;;  %p1896_p9 = scmp.lt.u32.totalorder %s1892_s24, %s2294_s0 }
  0x18   :  { %p1898_p10 = pnand %p1896_p9, %p1893_p8 }
  0x1a   :  { %1901 = shalt.err (!%p1898_p10)
}
  0x1b   :  { %s1902_s1 = scalar_lea.vmem %s27_s18, 128  ;;  %p1907_p12 = scmp.lt.s32.totalorder %s27_s18, %s27_s18 }
  0x1c   :  { %p1903_p11 = scmp.ne.s32.totalorder %s27_s18, %s1902_s1  ;;  %p1908_p13 = scmp.lt.s32.totalorder %s1902_s1, %s1902_s1 }
  0x1e   :  { %p1909_p0 = por %p1908_p13, %p1907_p12 }
  0x20   :  { %p1910_p1 = pnand %p1909_p0, %p1903_p11 }
  0x22   :  { %1913 = shalt.err (!%p1910_p1)
}
  0x23   :  { %29 = dma.hbm_to_vmem [thread:$0]  %s2294_s0, 128, %s27_s18, [#allocation6]  }
  0x24   :  { %s1914_s15 = scalar_lea.hbm %s2296_s2, 128 }
  0x25   :  { %p1915_p2 = scmp.ne.s32.totalorder %s2296_s2, %s1914_s15  ;;  %p1918_p3 = scmp.lt.u32.totalorder %s1914_s15, %s2296_s2 }
  0x27   :  { %p1920_p4 = pnand %p1918_p3, %p1915_p2 }
  0x29   :  { %1923 = shalt.err (!%p1920_p4)
}
  0x2a   :  { %s1924_s23 = scalar_lea.vmem %s49_s20, 128  ;;  %p1929_p6 = scmp.lt.s32.totalorder %s49_s20, %s49_s20 }
  0x2b   :  { %p1925_p5 = scmp.ne.s32.totalorder %s49_s20, %s1924_s23  ;;  %p1930_p7 = scmp.lt.s32.totalorder %s1924_s23, %s1924_s23 }
  0x2d   :  { %p1931_p8 = por %p1930_p7, %p1929_p6 }
  0x2f   :  { %p1932_p9 = pnand %p1931_p8, %p1925_p5 }
  0x31   :  { %1935 = shalt.err (!%p1932_p9)
}
  0x32   :  { %51 = dma.hbm_to_vmem [thread:$0]  %s2296_s2, 128, %s49_s20, [#allocation8]  }
  0x33   :  { %s1973_s24 = smov [#allocation10]   ;;  %s1936_s28 = scalar_lea.hbm %s2304_s10, 2048 }
  0x34   :  { %s67_s25 = sshll.u32 %s1973_s24, 4  ;;  %p1937_p10 = scmp.ne.s32.totalorder %s2304_s10, %s1936_s28  ;;  %s68_s25 = int_to_ptr.vmem [resolvable:$true] %s67_s25 }
  0x35   :  { %p1940_p11 = scmp.lt.u32.totalorder %s1936_s28, %s2304_s10 }
  0x37   :  { %p1942_p12 = pnand %p1940_p11, %p1937_p10 }
  0x39   :  { %1945 = shalt.err (!%p1942_p12)
}
  0x3a   :  { %s1946_s13 = scalar_lea.vmem %s68_s25, 2048  ;;  %p1951_p0 = scmp.lt.s32.totalorder %s68_s25, %s68_s25 }
  0x3b   :  { %p1947_p13 = scmp.ne.s32.totalorder %s68_s25, %s1946_s13  ;;  %p1952_p1 = scmp.lt.s32.totalorder %s1946_s13, %s1946_s13 }
  0x3d   :  { %p1953_p2 = por %p1952_p1, %p1951_p0 }
  0x3f   :  { %p1954_p3 = pnand %p1953_p2, %p1947_p13 }
  0x41   :  { %1957 = shalt.err (!%p1954_p3)
}
  0x42   :  { %s1974_s2 = smov 4  }
  0x43   :  { %73 = dma.hbm_to_vmem [thread:$0]  %s2304_s10, 2048, %s68_s25, [#allocation11], %s1970_s14, %s1970_s14, %s1974_s2  }
  0x44   :  { %1958 = dma.done.wait [#allocation6], 128  }
  0x45   :  { %1959 = vsyncadd [#allocation6], 4294967168 }
  0x46   :  { %1960 = dma.done.wait [#allocation8], 2176  }
  0x47   :  { %1961 = vsyncadd [#allocation8], 4294965120 }
  0x48   :  { %1962 = dma.done.wait [#allocation11], 2048  }
  0x49   :  { %1963 = vsyncadd [#allocation11], 4294965248  ;;  %s93_s16 = sld [smem:[#allocation0]]   ;;  %s1975_s17 = smov 512   ;;  %v1976_v0 = vmov 2   ;;  %v1977_v1 = vmov 0   ;;  %v160_v19 = vlaneseq }
  0x4a   :  { %105 = sst [smem:[#allocation13]] %s1975_s17  ;;  %1836 = vset.pattern.permute.xlu1 %v1976_v0  ;;  %1834 = vset.pattern.permute.xlu0 %v1977_v1  ;;  %s1978_s19 = smov [#allocation2]   ;;  %v1979_v2 = vmov 0.0   ;;  %v1988_v4 = vmov 3   ;;  %v1989_v5 = vmov 1   ;;  %v1990_v6 = vmov 4  }
  0x4b   :  { %107 = sst [smem:[#allocation13 + $0x1]] %s1975_s17  ;;  %s101_s21 = sshll.u32 %s1978_s19, 4  ;;  %302 = vmatprep.mubr.f32.mxu0 %v1979_v2  ;;  %v1991_v7 = vmov 5   ;;  %v1992_v8 = vmov 6   ;;  %v1993_v9 = vmov 7   ;;  %v2129_v22 = vand.u32 127, %v160_v19  ;;  %s102_s21 = int_to_ptr.vmem [resolvable:$true] %s101_s21 }
  0x4c   :  { %109 = sst [smem:[#allocation13 + $0x2]] %s1974_s2  ;;  %s1980_s23 = smov 128   ;;  %vm234_vm8 = vcmask 130048   ;;  %v525_v59 = vshrl.u32 %v160_v19, 7 }
  0x4d   :  { %111 = sst [smem:[#allocation13 + $0x3]] %s1970_s14  ;;  %s1981_s18 = smov 2  }
  0x4e   :  { %119 = sst [smem:[#allocation13 + $0x7]] %s1970_s14  ;;  %s1982_s24 = smov 256   ;;  %v2154_v60 = vsub.s32 0, %v525_v59  ;;  %v2156_v62 = vsub.s32 1, %v525_v59 }
  0x4f   :  { %121 = sst [smem:[#allocation13 + $0x8]] %s1974_s2  ;;  %s1707_s10 = sshll.u32 %s93_s16, 26 }
  0x50   :  { %113 = sst [smem:[#allocation13 + $0x4]] %s1980_s23  ;;  %s1708_s0 = sadd.s32 134217728, %s1707_s10 }
  0x51   :  { %115 = sst [smem:[#allocation13 + $0x5]] %s1981_s18  ;;  %s1983_s25 = smov [#allocation4]  }
  0x52   :  { %117 = sst [smem:[#allocation13 + $0x6]] %s1982_s24  ;;  %s1984_s26 = smov [#allocation12]  }
  0x53   :  { %123 = dma.general %s2298_s4, 32768, %s102_s21, %s1983_s25, %s1984_s26, [#allocation13], %s1708_s0, 0  }
  0x54   :  { %140 = sst [smem:[#allocation15]] %s1982_s24  ;;  %s1985_s1 = smov [#allocation3]  }
  0x55   :  { %142 = sst [smem:[#allocation15 + $0x1]] %s1982_s24  ;;  %s136_s22 = sshll.u32 %s1985_s1, 4  ;;  %s137_s22 = int_to_ptr.vmem [resolvable:$true] %s136_s22 }
  0x56   :  { %144 = sst [smem:[#allocation15 + $0x2]] %s1981_s18  ;;  %s1986_s29 = smov [#allocation4 + $0x1]  }
  0x57   :  { %146 = sst [smem:[#allocation15 + $0x3]] %s1970_s14  ;;  %s1987_s30 = smov [#allocation14]  }
  0x58   :  { %148 = sst [smem:[#allocation15 + $0x4]] %s1980_s23 }
  0x59   :  { %150 = sst [smem:[#allocation15 + $0x5]] %s1981_s18 }
  0x5a   :  { %152 = sst [smem:[#allocation15 + $0x6]] %s1980_s23 }
  0x5b   :  { %154 = sst [smem:[#allocation15 + $0x7]] %s1970_s14 }
  0x5c   :  { %156 = sst [smem:[#allocation15 + $0x8]] %s1974_s2 }
  0x5d   :  { %158 = dma.general %s2301_s7, 8192, %s137_s22, %s1986_s29, %s1987_s30, [#allocation15], %s1708_s0, 0  }
  0x5e   :  { %v159_v3 = vld [vmem:[#allocation5] sm:$0xff]  ;;  %v219_v10 = vld [vmem:[#allocation7 + $0x8] sm:$0xff]  ;;  %v218_v13 = vld [vmem:[#allocation7] sm:$0xff] }
  0x5f   :  { %177 = vperm.xlu1 %1836, %v159_v3   ;;  %163 = vperm.xlu0 %1834, %v159_v3   ;;  %v227_v11 = vld [vmem:[#allocation7 + $0x48] sm:$0xff]  ;;  %v226_v14 = vld [vmem:[#allocation7 + $0x40] sm:$0xff]  ;;  %v221_v16 = vld [vmem:[#allocation7 + $0x18] sm:$0xff] }
  0x60   :  { %v1764_v12 = vpack.c.bf16 %v227_v11, %v219_v10  ;;  %v1766_v15 = vpack.c.bf16 %v226_v14, %v218_v13  ;;  %v229_v17 = vld [vmem:[#allocation7 + $0x58] sm:$0xff]  ;;  %v220_v40 = vld [vmem:[#allocation7 + $0x10] sm:$0xff]  ;;  %v223_v43 = vld [vmem:[#allocation7 + $0x28] sm:$0xff] }
  0x61   :  { %v1768_v18 = vpack.c.bf16 %v229_v17, %v221_v16  ;;  %v228_v41 = vld [vmem:[#allocation7 + $0x50] sm:$0xff]  ;;  %v231_v44 = vld [vmem:[#allocation7 + $0x68] sm:$0xff]  ;;  %v222_v50 = vld [vmem:[#allocation7 + $0x20] sm:$0xff] }
  0x62   :  { %1765 = vmatprep.subr.bf16.mxu0 %v1764_v12  ;;  %v1770_v47 = vpack.c.bf16 %v228_v41, %v220_v40  ;;  %v1772_v49 = vpack.c.bf16 %v231_v44, %v223_v43  ;;  %v230_v51 = vld [vmem:[#allocation7 + $0x60] sm:$0xff]  ;;  %v225_v52 = vld [vmem:[#allocation7 + $0x38] sm:$0xff]  ;;  %v224_v56 = vld [vmem:[#allocation7 + $0x30] sm:$0xff]  ;;  %v542_v12 = vsub.s32 4, %v525_v59 }
  0x63   :  { %1837 = vset.pattern.permute.xlu1 %v1988_v4  ;;  %1835 = vset.pattern.permute.xlu0 %v1989_v5  ;;  %v233_v53 = vld [vmem:[#allocation7 + $0x78] sm:$0xff]  ;;  %v1774_v54 = vpack.c.bf16 %v230_v51, %v222_v50  ;;  %v232_v57 = vld [vmem:[#allocation7 + $0x70] sm:$0xff]  ;;  %v522_v61 = vld [vmem:[#allocation9] sm:$0xff] }
  0x64   :  { %184 = vperm.xlu1 %1837, %v159_v3   ;;  %170 = vperm.xlu0 %1835, %v159_v3   ;;  %v1776_v55 = vpack.c.bf16 %v233_v53, %v225_v52  ;;  %v1778_v58 = vpack.c.bf16 %v232_v57, %v224_v56  ;;  %v572_v63 = vld [vmem:[%s2297_s3] sm:$0xff]  ;;  %v527_v0 = vrot.slane %v522_v61, %v2154_v60 }
  0x65   :  { %1767 = vmatpush1.bf16.msra.mxu0 %v1766_v15  ;;  %v531_v4 = vrot.slane %v522_v61, %v2156_v62  ;;  %v546_v15 = vsub.s32 5, %v525_v59 }
  0x66   :  { %1769 = vmatprep.subr.bf16.mxu0 %v1768_v18 }
  0x68   :  { %1838 = vset.pattern.permute.xlu1 %v1990_v6  ;;  %1839 = vset.pattern.permute.xlu0 %v1991_v7  ;;  %v2165_v6 = vsub.s32 3, %v525_v59 }
  0x69   :  { %191 = vperm.xlu1 %1838, %v159_v3   ;;  %198 = vperm.xlu0 %1839, %v159_v3  }
  0x6a   :  { %v539_v14 = vrot.slane %v522_v61, %v2165_v6 }
  0x6d   :  { %1840 = vset.pattern.permute.xlu1 %v1992_v8  ;;  %1842 = vset.pattern.permute.xlu0 %v1993_v9  ;;  %v581_v8 = vrot.slane %v572_v63, %v2156_v62 }
  0x6e   :  { %205 = vperm.xlu1 %1840, %v159_v3  }
  0x72   :  { %1841 = vset.pattern.permute.xlu1 %v1993_v9 }
  0x73   :  { %212 = vperm.xlu1 %1841, %v159_v3   ;;  %v2162_v3 = vsub.s32 2, %v525_v59 }
  0x75   :  { %v535_v11 = vrot.slane %v522_v61, %v2162_v3  ;;  %v585_v17 = vrot.slane %v572_v63, %v2162_v3 }
  0xde   :  { %v178_v20 = vpop.permute.xlu1 %177  ;;  %v164_v21 = vpop.permute.xlu0 %163 }
  0xdf   :  { %vm165_vm0 = vcmp.eq.s32.totalorder %v2129_v22, %v164_v21  ;;  %vm179_vm1 = vcmp.eq.s32.totalorder %v2129_v22, %v178_v20  ;;  %v589_v20 = vrot.slane %v572_v63, %v2165_v6 }
  0xe0   :  { %v1711_v25 = vsel %vm165_vm0, 1.0, %v1979_v2  ;;  %v1713_v28 = vsel %vm179_vm1, 1.0, %v1979_v2 }
  0xe3   :  { %v185_v23 = vpop.permute.xlu1 %184  ;;  %v171_v24 = vpop.permute.xlu0 %170 }
  0xe4   :  { %vm172_vm2 = vcmp.eq.s32.totalorder %v2129_v22, %v171_v24  ;;  %vm186_vm3 = vcmp.eq.s32.totalorder %v2129_v22, %v185_v23 }
  0xe5   :  { %v1712_v26 = vsel %vm172_vm2, 1.0, %v1979_v2  ;;  %v1714_v32 = vsel %vm186_vm3, 1.0, %v1979_v2 }
  0xe6   :  { %v175_v27 = vadd.f32 %v1712_v26, %v1711_v25  ;;  %v543_v25 = vrot.slane %v522_v61, %v542_v12  ;;  %v550_v26 = vsub.s32 6, %v525_v59 }
  0xe8   :  { %v182_v29 = vadd.f32 %v1713_v28, %v175_v27  ;;  %v192_v30 = vpop.permute.xlu1 %191  ;;  %v199_v31 = vpop.permute.xlu0 %198  ;;  %v601_v44 = vrot.slane %v572_v63, %v550_v26 }
  0xe9   :  { %vm193_vm4 = vcmp.eq.s32.totalorder %v2129_v22, %v192_v30  ;;  %vm200_vm5 = vcmp.eq.s32.totalorder %v2129_v22, %v199_v31  ;;  %v554_v30 = vsub.s32 7, %v525_v59 }
  0xea   :  { %v189_v33 = vadd.f32 %v1714_v32, %v182_v29  ;;  %v1715_v34 = vsel %vm193_vm4, 1.0, %v1979_v2  ;;  %v1716_v36 = vsel %vm200_vm5, 1.0, %v1979_v2  ;;  %v547_v29 = vrot.slane %v522_v61, %v546_v15 }
  0xeb   :  { %v593_v32 = vrot.slane %v572_v63, %v542_v12 }
  0xec   :  { %v196_v35 = vadd.f32 %v1715_v34, %v189_v33 }
  0xed   :  { %v206_v37 = vpop.permute.xlu1 %205 }
  0xee   :  { %vm207_vm6 = vcmp.eq.s32.totalorder %v2129_v22, %v206_v37  ;;  %v203_v38 = vadd.f32 %v1716_v36, %v196_v35  ;;  %v597_v35 = vrot.slane %v572_v63, %v546_v15 }
  0xef   :  { %v1717_v39 = vsel %vm207_vm6, 1.0, %v1979_v2 }
  0xf0   :  { %v210_v45 = vadd.f32 %v1717_v39, %v203_v38  ;;  %v551_v39 = vrot.slane %v522_v61, %v550_v26 }
  0xf2   :  { %v213_v42 = vpop.permute.xlu1 %212 }
  0xf3   :  { %vm214_vm7 = vcmp.eq.s32.totalorder %v2129_v22, %v213_v42  ;;  %v555_v42 = vrot.slane %v522_v61, %v554_v30 }
  0xf4   :  { %v1718_v46 = vsel %vm214_vm7, 1.0, %v1979_v2 }
  0xf5   :  { %v217_v48 = vadd.f32 %v1718_v46, %v210_v45 }
  0xf7   :  { %1719 = vmatmul.mubr.msk.f32.vlgmr.msra.gmra.mrb[0].mxu0 %vm234_vm8, %v217_v48 }
  0xf8   :  { %1771 = vmatpush1.bf16.msra.mxu0 %v1770_v47  ;;  %373 = vmatprep.mubr.f32.mxu0 %v1979_v2  ;;  %v605_v47 = vrot.slane %v572_v63, %v554_v30 }
  0xf9   :  { %1773 = vmatprep.subr.bf16.mxu0 %v1772_v49 }
  0xfb   :  { %1720 = vmatmul.mubr.msk.f32.vlgmr.msra.gmra.mrb[2].mxu0 %vm234_vm8, %v217_v48 }
  0xfc   :  { %1775 = vmatpush1.bf16.msra.mxu0 %v1774_v54  ;;  %444 = vmatprep.mubr.f32.mxu0 %v1979_v2 }
  0xfd   :  { %1777 = vmatprep.subr.bf16.mxu0 %v1776_v55 }
  0xff   :  { %1721 = vmatmul.mubr.msk.f32.vlgmr.msra.gmra.mrb[4].mxu0 %vm234_vm8, %v217_v48 }
 0x100   :  { %1779 = vmatpush1.bf16.msra.mxu0 %v1778_v58  ;;  %515 = vmatprep.mubr.f32.mxu0 %v1979_v2  ;;  %v577_v2 = vrot.slane %v572_v63, %v2154_v60 }
 0x103   :  { %1722 = vmatmul.mubr.msk.f32.vlgmr.msra.gmra.mrb[6].mxu0 %vm234_vm8, %v217_v48 }
 0x1ca   :  { %v304_v7 = vpop.f32.mrb[0].mxu0 }
 0x1cb   :  { %v564_v9 = vmul.f32 %v527_v0, %v304_v7  ;;  %v306_v10 = vpop.f32.mrb[1].mxu0 }
 0x1cc   :  { %v565_v13 = vmul.f32 %v531_v4, %v306_v10 }
 0x1cd   :  { %v2171_v16 = vadd.f32 %v577_v2, %v564_v9 }
 0x1ce   :  { %v615_v18 = vadd.f32 %v581_v8, %v565_v13  ;;  %v375_v19 = vpop.f32.mrb[2].mxu0 }
 0x1cf   :  { %v622_v21 = vmax.f32 %v2171_v16, 0.0  ;;  %v566_v23 = vmul.f32 %v535_v11, %v375_v19  ;;  %v377_v24 = vpop.f32.mrb[3].mxu0 }
 0x1d0   :  { %v623_v27 = vmax.f32 %v615_v18, 0.0  ;;  %v567_v28 = vmul.f32 %v539_v14, %v377_v24 }
 0x1d1   :  { %v2176_v31 = vadd.f32 %v585_v17, %v566_v23 }
 0x1d2   :  { %v617_v33 = vadd.f32 %v589_v20, %v567_v28  ;;  %v446_v34 = vpop.f32.mrb[4].mxu0 }
 0x1d3   :  { %v624_v36 = vmax.f32 %v2176_v31, 0.0  ;;  %v568_v37 = vmul.f32 %v543_v25, %v446_v34  ;;  %v448_v38 = vpop.f32.mrb[5].mxu0 }
 0x1d4   :  { %v625_v40 = vmax.f32 %v617_v33, 0.0  ;;  %v569_v41 = vmul.f32 %v547_v29, %v448_v38 }
 0x1d5   :  { %v2179_v43 = vadd.f32 %v593_v32, %v568_v37 }
 0x1d6   :  { %v2181_v45 = vadd.f32 %v597_v35, %v569_v41  ;;  %v517_v46 = vpop.f32.mrb[6].mxu0 }
 0x1d7   :  { %v626_v48 = vmax.f32 %v2179_v43, 0.0  ;;  %v570_v49 = vmul.f32 %v551_v39, %v517_v46  ;;  %v519_v50 = vpop.f32.mrb[7].mxu0 }
 0x1d8   :  { %v627_v51 = vmax.f32 %v2181_v45, 0.0  ;;  %v571_v52 = vmul.f32 %v555_v42, %v519_v50 }
 0x1d9   :  { %v2185_v53 = vadd.f32 %v601_v44, %v570_v49 }
 0x1da   :  { %v2187_v54 = vadd.f32 %v605_v47, %v571_v52 }
 0x1db   :  { %v628_v55 = vmax.f32 %v2185_v53, 0.0 }
 0x1dc   :  { %v629_v56 = vmax.f32 %v2187_v54, 0.0 }
 0x1dd   :  { %1964 = dma.done.wait [#allocation4], 32768 }
 0x1de   :  { %1965 = vsyncadd [#allocation4], 4294934528  ;;  %v2191_v57 = vpack.c.bf16 %v623_v27, %v623_v27  ;;  %v2193_v58 = vpack.c.bf16 %v625_v40, %v625_v40  ;;  %v635_v59 = vld [vmem:[#allocation2 + $0x8] sm:$0xff]  ;;  %v634_v63 = vld [vmem:[#allocation2] sm:$0xff]  ;;  %v2210_v16 = vpack.c.bf16 %v627_v51, %v627_v51 }
 0x1df   :  { %v699_v61 = vld [vmem:[#allocation2 + $0x208] sm:$0xff]  ;;  %898 = vmatprep.subr.bf16.mxu1 %v635_v59  ;;  %v698_v0 = vld [vmem:[#allocation2 + $0x200] sm:$0xff]  ;;  %v640_v31 = vld [vmem:[#allocation2 + $0x30] sm:$0xff] }
 0x1e0   :  { %930 = vmatprep.mubr.bf16.mxu1 %v2191_v57  ;;  %971 = vmatprep.mubr.bf16.mxu0 %v2193_v58  ;;  %v639_v4 = vld [vmem:[#allocation2 + $0x28] sm:$0xff]  ;;  %v638_v7 = vld [vmem:[#allocation2 + $0x20] sm:$0xff]  ;;  %v644_v51 = vld [vmem:[#allocation2 + $0x50] sm:$0xff] }
 0x1e1   :  { %939 = vmatprep.subr.bf16.mxu0 %v699_v61  ;;  %v703_v2 = vld [vmem:[#allocation2 + $0x228] sm:$0xff]  ;;  %899 = vmatpush1.bf16.msra.mxu1 %v634_v63  ;;  %v702_v8 = vld [vmem:[#allocation2 + $0x220] sm:$0xff]  ;;  %v772_v53 = vld [vmem:[#allocation2 + $0x450] sm:$0xff] }
 0x1e2   :  { %940 = vmatpush1.bf16.msra.mxu0 %v698_v0  ;;  %900 = vmatprep.subr.bf16.mxu1 %v639_v4  ;;  %v643_v9 = vld [vmem:[#allocation2 + $0x48] sm:$0xff]  ;;  %v642_v11 = vld [vmem:[#allocation2 + $0x40] sm:$0xff] }
 0x1e3   :  { %941 = vmatprep.subr.bf16.mxu0 %v703_v2  ;;  %v707_v10 = vld [vmem:[#allocation2 + $0x248] sm:$0xff]  ;;  %v706_v12 = vld [vmem:[#allocation2 + $0x240] sm:$0xff] }
 0x1e4   :  { %v647_v13 = vld [vmem:[#allocation2 + $0x68] sm:$0xff]  ;;  %v646_v15 = vld [vmem:[#allocation2 + $0x60] sm:$0xff] }
 0x1e5   :  { %901 = vmatpush1.bf16.msra.mxu1 %v638_v7  ;;  %v711_v14 = vld [vmem:[#allocation2 + $0x268] sm:$0xff]  ;;  %v710_v17 = vld [vmem:[#allocation2 + $0x260] sm:$0xff] }
 0x1e6   :  { %942 = vmatpush1.bf16.msra.mxu0 %v702_v8  ;;  %902 = vmatprep.subr.bf16.mxu1 %v643_v9  ;;  %v651_v18 = vld [vmem:[#allocation2 + $0x88] sm:$0xff]  ;;  %v650_v20 = vld [vmem:[#allocation2 + $0x80] sm:$0xff] }
 0x1e7   :  { %943 = vmatprep.subr.bf16.mxu0 %v707_v10  ;;  %v715_v19 = vld [vmem:[#allocation2 + $0x288] sm:$0xff]  ;;  %v714_v23 = vld [vmem:[#allocation2 + $0x280] sm:$0xff] }
 0x1e8   :  { %v655_v24 = vld [vmem:[#allocation2 + $0xa8] sm:$0xff]  ;;  %v654_v26 = vld [vmem:[#allocation2 + $0xa0] sm:$0xff] }
 0x1e9   :  { %903 = vmatpush1.bf16.msra.mxu1 %v642_v11  ;;  %v719_v25 = vld [vmem:[#allocation2 + $0x2a8] sm:$0xff]  ;;  %v718_v27 = vld [vmem:[#allocation2 + $0x2a0] sm:$0xff] }
 0x1ea   :  { %944 = vmatpush1.bf16.msra.mxu0 %v706_v12  ;;  %904 = vmatprep.subr.bf16.mxu1 %v647_v13  ;;  %v659_v28 = vld [vmem:[#allocation2 + $0xc8] sm:$0xff]  ;;  %v658_v30 = vld [vmem:[#allocation2 + $0xc0] sm:$0xff] }
 0x1eb   :  { %945 = vmatprep.subr.bf16.mxu0 %v711_v14  ;;  %v723_v29 = vld [vmem:[#allocation2 + $0x2c8] sm:$0xff]  ;;  %v722_v32 = vld [vmem:[#allocation2 + $0x2c0] sm:$0xff] }
 0x1ec   :  { %v663_v33 = vld [vmem:[#allocation2 + $0xe8] sm:$0xff]  ;;  %v662_v35 = vld [vmem:[#allocation2 + $0xe0] sm:$0xff] }
 0x1ed   :  { %905 = vmatpush1.bf16.msra.mxu1 %v646_v15  ;;  %v727_v34 = vld [vmem:[#allocation2 + $0x2e8] sm:$0xff]  ;;  %v726_v37 = vld [vmem:[#allocation2 + $0x2e0] sm:$0xff] }
 0x1ee   :  { %946 = vmatpush1.bf16.msra.mxu0 %v710_v17  ;;  %906 = vmatprep.subr.bf16.mxu1 %v651_v18  ;;  %v667_v38 = vld [vmem:[#allocation2 + $0x108] sm:$0xff]  ;;  %v666_v40 = vld [vmem:[#allocation2 + $0x100] sm:$0xff] }
 0x1ef   :  { %947 = vmatprep.subr.bf16.mxu0 %v715_v19  ;;  %v731_v39 = vld [vmem:[#allocation2 + $0x308] sm:$0xff]  ;;  %v730_v41 = vld [vmem:[#allocation2 + $0x300] sm:$0xff] }
 0x1f0   :  { %v671_v42 = vld [vmem:[#allocation2 + $0x128] sm:$0xff]  ;;  %v670_v46 = vld [vmem:[#allocation2 + $0x120] sm:$0xff] }
 0x1f1   :  { %907 = vmatpush1.bf16.msra.mxu1 %v650_v20  ;;  %v735_v44 = vld [vmem:[#allocation2 + $0x328] sm:$0xff]  ;;  %v734_v47 = vld [vmem:[#allocation2 + $0x320] sm:$0xff] }
 0x1f2   :  { %948 = vmatpush1.bf16.msra.mxu0 %v714_v23  ;;  %908 = vmatprep.subr.bf16.mxu1 %v655_v24  ;;  %v675_v49 = vld [vmem:[#allocation2 + $0x148] sm:$0xff]  ;;  %v674_v52 = vld [vmem:[#allocation2 + $0x140] sm:$0xff] }
 0x1f3   :  { %949 = vmatprep.subr.bf16.mxu0 %v719_v25  ;;  %v739_v50 = vld [vmem:[#allocation2 + $0x348] sm:$0xff]  ;;  %v738_v59 = vld [vmem:[#allocation2 + $0x340] sm:$0xff] }
 0x1f4   :  { %v679_v61 = vld [vmem:[#allocation2 + $0x168] sm:$0xff]  ;;  %v678_v0 = vld [vmem:[#allocation2 + $0x160] sm:$0xff] }
 0x1f5   :  { %909 = vmatpush1.bf16.msra.mxu1 %v654_v26  ;;  %v743_v63 = vld [vmem:[#allocation2 + $0x368] sm:$0xff]  ;;  %v742_v4 = vld [vmem:[#allocation2 + $0x360] sm:$0xff]  ;;  %v637_v26 = vld [vmem:[#allocation2 + $0x18] sm:$0xff] }
 0x1f6   :  { %950 = vmatpush1.bf16.msra.mxu0 %v718_v27  ;;  %910 = vmatprep.subr.bf16.mxu1 %v659_v28  ;;  %v683_v2 = vld [vmem:[#allocation2 + $0x188] sm:$0xff]  ;;  %v682_v8 = vld [vmem:[#allocation2 + $0x180] sm:$0xff]  ;;  %v2200_v27 = vpack.c.bf16 %v622_v21, %v622_v21  ;;  %v2205_v28 = vpack.c.bf16 %v624_v36, %v624_v36 }
 0x1f7   :  { %951 = vmatprep.subr.bf16.mxu0 %v723_v29  ;;  %v747_v7 = vld [vmem:[#allocation2 + $0x388] sm:$0xff]  ;;  %v746_v9 = vld [vmem:[#allocation2 + $0x380] sm:$0xff] }
 0x1f8   :  { %v687_v10 = vld [vmem:[#allocation2 + $0x1a8] sm:$0xff]  ;;  %v686_v12 = vld [vmem:[#allocation2 + $0x1a0] sm:$0xff] }
 0x1f9   :  { %911 = vmatpush1.bf16.msra.mxu1 %v658_v30  ;;  %v751_v11 = vld [vmem:[#allocation2 + $0x3a8] sm:$0xff]  ;;  %v750_v13 = vld [vmem:[#allocation2 + $0x3a0] sm:$0xff]  ;;  %v636_v30 = vld [vmem:[#allocation2 + $0x10] sm:$0xff] }
 0x1fa   :  { %952 = vmatpush1.bf16.msra.mxu0 %v722_v32  ;;  %912 = vmatprep.subr.bf16.mxu1 %v663_v33  ;;  %v691_v14 = vld [vmem:[#allocation2 + $0x1c8] sm:$0xff]  ;;  %v690_v17 = vld [vmem:[#allocation2 + $0x1c0] sm:$0xff]  ;;  %v641_v33 = vld [vmem:[#allocation2 + $0x38] sm:$0xff] }
 0x1fb   :  { %953 = vmatprep.subr.bf16.mxu0 %v727_v34  ;;  %v755_v15 = vld [vmem:[#allocation2 + $0x3c8] sm:$0xff]  ;;  %v754_v18 = vld [vmem:[#allocation2 + $0x3c0] sm:$0xff]  ;;  %v645_v34 = vld [vmem:[#allocation2 + $0x58] sm:$0xff] }
 0x1fc   :  { %v695_v19 = vld [vmem:[#allocation2 + $0x1e8] sm:$0xff]  ;;  %v694_v23 = vld [vmem:[#allocation2 + $0x1e0] sm:$0xff] }
 0x1fd   :  { %913 = vmatpush1.bf16.msra.mxu1 %v662_v35  ;;  %v759_v20 = vld [vmem:[#allocation2 + $0x3e8] sm:$0xff]  ;;  %v758_v24 = vld [vmem:[#allocation2 + $0x3e0] sm:$0xff] }
 0x1fe   :  { %954 = vmatpush1.bf16.msra.mxu0 %v726_v37  ;;  %914 = vmatprep.subr.bf16.mxu1 %v667_v38  ;;  %v763_v25 = vld [vmem:[#allocation2 + $0x408] sm:$0xff]  ;;  %v762_v29 = vld [vmem:[#allocation2 + $0x400] sm:$0xff]  ;;  %v649_v37 = vld [vmem:[#allocation2 + $0x78] sm:$0xff] }
 0x1ff   :  { %955 = vmatprep.subr.bf16.mxu0 %v731_v39  ;;  %v767_v32 = vld [vmem:[#allocation2 + $0x428] sm:$0xff]  ;;  %v766_v21 = vld [vmem:[#allocation2 + $0x420] sm:$0xff]  ;;  %v648_v39 = vld [vmem:[#allocation2 + $0x70] sm:$0xff] }
 0x200   :  { %v771_v36 = vld [vmem:[#allocation2 + $0x448] sm:$0xff]  ;;  %v770_v45 = vld [vmem:[#allocation2 + $0x440] sm:$0xff] }
 0x201   :  { %915 = vmatpush1.bf16.msra.mxu1 %v666_v40  ;;  %v775_v35 = vld [vmem:[#allocation2 + $0x468] sm:$0xff]  ;;  %v774_v38 = vld [vmem:[#allocation2 + $0x460] sm:$0xff] }
 0x202   :  { %956 = vmatpush1.bf16.msra.mxu0 %v730_v41  ;;  %916 = vmatprep.subr.bf16.mxu1 %v671_v42  ;;  %v779_v40 = vld [vmem:[#allocation2 + $0x488] sm:$0xff]  ;;  %v653_v41 = vld [vmem:[#allocation2 + $0x98] sm:$0xff]  ;;  %v652_v42 = vld [vmem:[#allocation2 + $0x90] sm:$0xff] }
 0x203   :  { %957 = vmatprep.subr.bf16.mxu0 %v735_v44  ;;  %v783_v44 = vld [vmem:[#allocation2 + $0x4a8] sm:$0xff]  ;;  %v830_v43 = vld [vmem:[#allocation2 + $0x620] sm:$0xff] }
 0x204   :  { %v834_v54 = vld [vmem:[#allocation2 + $0x640] sm:$0xff] }
 0x205   :  { %917 = vmatpush1.bf16.msra.mxu1 %v670_v46  ;;  %v657_v46 = vld [vmem:[#allocation2 + $0xb8] sm:$0xff] }
 0x206   :  { %958 = vmatpush1.bf16.msra.mxu0 %v734_v47  ;;  %918 = vmatprep.subr.bf16.mxu1 %v675_v49  ;;  %v782_v47 = vld [vmem:[#allocation2 + $0x4a0] sm:$0xff]  ;;  %v656_v49 = vld [vmem:[#allocation2 + $0xb0] sm:$0xff] }
 0x207   :  { %959 = vmatprep.subr.bf16.mxu0 %v739_v50  ;;  %v787_v50 = vld [vmem:[#allocation2 + $0x4c8] sm:$0xff] }
 0x209   :  { %919 = vmatpush1.bf16.msra.mxu1 %v674_v52  ;;  %v661_v52 = vld [vmem:[#allocation2 + $0xd8] sm:$0xff] }
 0x20a   :  { %960 = vmatpush1.bf16.msra.mxu0 %v738_v59  ;;  %920 = vmatprep.subr.bf16.mxu1 %v679_v61  ;;  %v786_v59 = vld [vmem:[#allocation2 + $0x4c0] sm:$0xff]  ;;  %v660_v61 = vld [vmem:[#allocation2 + $0xd0] sm:$0xff] }
 0x20b   :  { %961 = vmatprep.subr.bf16.mxu0 %v743_v63  ;;  %v791_v63 = vld [vmem:[#allocation2 + $0x4e8] sm:$0xff] }
 0x20d   :  { %921 = vmatpush1.bf16.msra.mxu1 %v678_v0  ;;  %v665_v0 = vld [vmem:[#allocation2 + $0xf8] sm:$0xff] }
 0x20e   :  { %962 = vmatpush1.bf16.msra.mxu0 %v742_v4  ;;  %922 = vmatprep.subr.bf16.mxu1 %v683_v2  ;;  %v790_v4 = vld [vmem:[#allocation2 + $0x4e0] sm:$0xff]  ;;  %v664_v2 = vld [vmem:[#allocation2 + $0xf0] sm:$0xff] }
 0x20f   :  { %963 = vmatprep.subr.bf16.mxu0 %v747_v7  ;;  %v795_v7 = vld [vmem:[#allocation2 + $0x508] sm:$0xff] }
 0x211   :  { %923 = vmatpush1.bf16.msra.mxu1 %v682_v8  ;;  %v669_v8 = vld [vmem:[#allocation2 + $0x118] sm:$0xff] }
 0x212   :  { %964 = vmatpush1.bf16.msra.mxu0 %v746_v9  ;;  %924 = vmatprep.subr.bf16.mxu1 %v687_v10  ;;  %v794_v9 = vld [vmem:[#allocation2 + $0x500] sm:$0xff]  ;;  %v668_v10 = vld [vmem:[#allocation2 + $0x110] sm:$0xff] }
 0x213   :  { %965 = vmatprep.subr.bf16.mxu0 %v751_v11  ;;  %v799_v11 = vld [vmem:[#allocation2 + $0x528] sm:$0xff] }
 0x215   :  { %925 = vmatpush1.bf16.msra.mxu1 %v686_v12  ;;  %v673_v12 = vld [vmem:[#allocation2 + $0x138] sm:$0xff] }
 0x216   :  { %966 = vmatpush1.bf16.msra.mxu0 %v750_v13  ;;  %926 = vmatprep.subr.bf16.mxu1 %v691_v14  ;;  %v798_v13 = vld [vmem:[#allocation2 + $0x520] sm:$0xff]  ;;  %v672_v14 = vld [vmem:[#allocation2 + $0x130] sm:$0xff] }
 0x217   :  { %967 = vmatprep.subr.bf16.mxu0 %v755_v15  ;;  %v803_v15 = vld [vmem:[#allocation2 + $0x548] sm:$0xff] }
 0x219   :  { %927 = vmatpush1.bf16.msra.mxu1 %v690_v17  ;;  %v677_v17 = vld [vmem:[#allocation2 + $0x158] sm:$0xff] }
 0x21a   :  { %968 = vmatpush1.bf16.msra.mxu0 %v754_v18  ;;  %928 = vmatprep.subr.bf16.mxu1 %v695_v19  ;;  %v802_v18 = vld [vmem:[#allocation2 + $0x540] sm:$0xff]  ;;  %v676_v19 = vld [vmem:[#allocation2 + $0x150] sm:$0xff] }
 0x21b   :  { %969 = vmatprep.subr.bf16.mxu0 %v759_v20  ;;  %v807_v20 = vld [vmem:[#allocation2 + $0x568] sm:$0xff] }
 0x21d   :  { %929 = vmatpush1.bf16.msra.mxu1 %v694_v23  ;;  %v681_v23 = vld [vmem:[#allocation2 + $0x178] sm:$0xff] }
 0x21e   :  { %970 = vmatpush1.bf16.msra.mxu0 %v758_v24  ;;  %1062 = vmatprep.subr.bf16.mxu1 %v637_v26  ;;  %v806_v24 = vld [vmem:[#allocation2 + $0x560] sm:$0xff]  ;;  %v811_v26 = vld [vmem:[#allocation2 + $0x588] sm:$0xff] }
 0x21f   :  { %980 = vmatprep.subr.bf16.mxu0 %v763_v25  ;;  %v680_v25 = vld [vmem:[#allocation2 + $0x170] sm:$0xff] }
 0x220   :  { %931 = vmatmul.mubr.bf16.vlgmr.msra.gmra.mrb[0].mxu1 %v2200_v27 }
 0x221   :  { %972 = vmatmul.mubr.bf16.vlgmr.msra.gmra.mrb[8].mxu0 %v2205_v28  ;;  %1063 = vmatpush1.bf16.msra.mxu1 %v636_v30  ;;  %v810_v30 = vld [vmem:[#allocation2 + $0x580] sm:$0xff] }
 0x222   :  { %981 = vmatpush1.bf16.msra.mxu0 %v762_v29  ;;  %1064 = vmatprep.subr.bf16.mxu1 %v641_v33  ;;  %v685_v29 = vld [vmem:[#allocation2 + $0x198] sm:$0xff]  ;;  %v815_v33 = vld [vmem:[#allocation2 + $0x5a8] sm:$0xff] }
 0x223   :  { %982 = vmatprep.subr.bf16.mxu0 %v767_v32  ;;  %1012 = vmatprep.mubr.bf16.mxu0 %v2210_v16  ;;  %v684_v32 = vld [vmem:[#allocation2 + $0x190] sm:$0xff] }
 0x224   :  { %1094 = vmatprep.mubr.bf16.mxu1 %v2191_v57  ;;  %v778_v57 = vld [vmem:[#allocation2 + $0x480] sm:$0xff] }
 0x225   :  { %1065 = vmatpush1.bf16.msra.mxu1 %v640_v31  ;;  %v814_v31 = vld [vmem:[#allocation2 + $0x5a0] sm:$0xff] }
 0x226   :  { %983 = vmatpush1.bf16.msra.mxu0 %v766_v21  ;;  %1066 = vmatprep.subr.bf16.mxu1 %v645_v34  ;;  %v689_v21 = vld [vmem:[#allocation2 + $0x1b8] sm:$0xff]  ;;  %v819_v34 = vld [vmem:[#allocation2 + $0x5c8] sm:$0xff] }
 0x227   :  { %984 = vmatprep.subr.bf16.mxu0 %v771_v36  ;;  %v688_v36 = vld [vmem:[#allocation2 + $0x1b0] sm:$0xff] }
 0x229   :  { %1067 = vmatpush1.bf16.msra.mxu1 %v644_v51  ;;  %v818_v51 = vld [vmem:[#allocation2 + $0x5c0] sm:$0xff] }
 0x22a   :  { %985 = vmatpush1.bf16.msra.mxu0 %v770_v45  ;;  %1068 = vmatprep.subr.bf16.mxu1 %v649_v37  ;;  %v693_v45 = vld [vmem:[#allocation2 + $0x1d8] sm:$0xff]  ;;  %v823_v37 = vld [vmem:[#allocation2 + $0x5e8] sm:$0xff] }
 0x22b   :  { %986 = vmatprep.subr.bf16.mxu0 %v775_v35  ;;  %v692_v35 = vld [vmem:[#allocation2 + $0x1d0] sm:$0xff] }
 0x22d   :  { %1069 = vmatpush1.bf16.msra.mxu1 %v648_v39  ;;  %v822_v39 = vld [vmem:[#allocation2 + $0x5e0] sm:$0xff] }
 0x22e   :  { %987 = vmatpush1.bf16.msra.mxu0 %v774_v38  ;;  %1070 = vmatprep.subr.bf16.mxu1 %v653_v41  ;;  %v697_v38 = vld [vmem:[#allocation2 + $0x1f8] sm:$0xff]  ;;  %v827_v41 = vld [vmem:[#allocation2 + $0x608] sm:$0xff] }
 0x22f   :  { %988 = vmatprep.subr.bf16.mxu0 %v779_v40  ;;  %v696_v40 = vld [vmem:[#allocation2 + $0x1f0] sm:$0xff] }
 0x231   :  { %1071 = vmatpush1.bf16.msra.mxu1 %v652_v42  ;;  %v2219_v42 = vpack.c.bf16 %v626_v48, %v626_v48  ;;  %v704_v48 = vld [vmem:[#allocation2 + $0x230] sm:$0xff] }
 0x232   :  { %989 = vmatpush1.bf16.msra.mxu0 %v778_v57  ;;  %1072 = vmatprep.subr.bf16.mxu1 %v657_v46  ;;  %v701_v57 = vld [vmem:[#allocation2 + $0x218] sm:$0xff]  ;;  %v700_v46 = vld [vmem:[#allocation2 + $0x210] sm:$0xff] }
 0x233   :  { %990 = vmatprep.subr.bf16.mxu0 %v783_v44  ;;  %v826_v44 = vld [vmem:[#allocation2 + $0x600] sm:$0xff] }
 0x235   :  { %1073 = vmatpush1.bf16.msra.mxu1 %v656_v49  ;;  %v705_v49 = vld [vmem:[#allocation2 + $0x238] sm:$0xff] }
 0x236   :  { %991 = vmatpush1.bf16.msra.mxu0 %v782_v47  ;;  %1074 = vmatprep.subr.bf16.mxu1 %v661_v52  ;;  %v831_v47 = vld [vmem:[#allocation2 + $0x628] sm:$0xff] }
 0x237   :  { %992 = vmatprep.subr.bf16.mxu0 %v787_v50  ;;  %v2224_v50 = vpack.c.bf16 %v629_v56, %v629_v56  ;;  %v835_v52 = vld [vmem:[#allocation2 + $0x648] sm:$0xff]  ;;  %v708_v56 = vld [vmem:[#allocation2 + $0x250] sm:$0xff] }
 0x239   :  { %1075 = vmatpush1.bf16.msra.mxu1 %v660_v61  ;;  %v839_v61 = vld [vmem:[#allocation2 + $0x668] sm:$0xff] }
 0x23a   :  { %993 = vmatpush1.bf16.msra.mxu0 %v786_v59  ;;  %1076 = vmatprep.subr.bf16.mxu1 %v665_v0  ;;  %v709_v59 = vld [vmem:[#allocation2 + $0x258] sm:$0xff]  ;;  %v712_v0 = vld [vmem:[#allocation2 + $0x270] sm:$0xff] }
 0x23b   :  { %994 = vmatprep.subr.bf16.mxu0 %v791_v63  ;;  %v838_v63 = vld [vmem:[#allocation2 + $0x660] sm:$0xff] }
 0x23d   :  { %1077 = vmatpush1.bf16.msra.mxu1 %v664_v2  ;;  %v717_v2 = vld [vmem:[#allocation2 + $0x298] sm:$0xff] }
 0x23e   :  { %995 = vmatpush1.bf16.msra.mxu0 %v790_v4  ;;  %1078 = vmatprep.subr.bf16.mxu1 %v669_v8  ;;  %v843_v4 = vld [vmem:[#allocation2 + $0x688] sm:$0xff] }
 0x23f   :  { %996 = vmatprep.subr.bf16.mxu0 %v795_v7  ;;  %v716_v7 = vld [vmem:[#allocation2 + $0x290] sm:$0xff]  ;;  %v847_v8 = vld [vmem:[#allocation2 + $0x6a8] sm:$0xff] }
 0x241   :  { %1079 = vmatpush1.bf16.msra.mxu1 %v668_v10  ;;  %v846_v10 = vld [vmem:[#allocation2 + $0x6a0] sm:$0xff] }
 0x242   :  { %997 = vmatpush1.bf16.msra.mxu0 %v794_v9  ;;  %1080 = vmatprep.subr.bf16.mxu1 %v673_v12  ;;  %v721_v9 = vld [vmem:[#allocation2 + $0x2b8] sm:$0xff]  ;;  %v851_v12 = vld [vmem:[#allocation2 + $0x6c8] sm:$0xff] }
 0x243   :  { %998 = vmatprep.subr.bf16.mxu0 %v799_v11  ;;  %v720_v11 = vld [vmem:[#allocation2 + $0x2b0] sm:$0xff] }
 0x245   :  { %1081 = vmatpush1.bf16.msra.mxu1 %v672_v14  ;;  %v850_v14 = vld [vmem:[#allocation2 + $0x6c0] sm:$0xff] }
 0x246   :  { %999 = vmatpush1.bf16.msra.mxu0 %v798_v13  ;;  %1082 = vmatprep.subr.bf16.mxu1 %v677_v17  ;;  %v725_v13 = vld [vmem:[#allocation2 + $0x2d8] sm:$0xff]  ;;  %v855_v17 = vld [vmem:[#allocation2 + $0x6e8] sm:$0xff] }
 0x247   :  { %1000 = vmatprep.subr.bf16.mxu0 %v803_v15  ;;  %v724_v15 = vld [vmem:[#allocation2 + $0x2d0] sm:$0xff] }
 0x249   :  { %1083 = vmatpush1.bf16.msra.mxu1 %v676_v19  ;;  %v854_v19 = vld [vmem:[#allocation2 + $0x6e0] sm:$0xff] }
 0x24a   :  { %1001 = vmatpush1.bf16.msra.mxu0 %v802_v18  ;;  %1084 = vmatprep.subr.bf16.mxu1 %v681_v23  ;;  %v729_v18 = vld [vmem:[#allocation2 + $0x2f8] sm:$0xff]  ;;  %v859_v23 = vld [vmem:[#allocation2 + $0x708] sm:$0xff] }
 0x24b   :  { %1002 = vmatprep.subr.bf16.mxu0 %v807_v20  ;;  %v728_v20 = vld [vmem:[#allocation2 + $0x2f0] sm:$0xff] }
 0x24d   :  { %1085 = vmatpush1.bf16.msra.mxu1 %v680_v25  ;;  %v858_v25 = vld [vmem:[#allocation2 + $0x700] sm:$0xff] }
 0x24e   :  { %1003 = vmatpush1.bf16.msra.mxu0 %v806_v24  ;;  %1086 = vmatprep.subr.bf16.mxu1 %v685_v29  ;;  %v733_v24 = vld [vmem:[#allocation2 + $0x318] sm:$0xff]  ;;  %v863_v29 = vld [vmem:[#allocation2 + $0x728] sm:$0xff] }
 0x24f   :  { %1004 = vmatprep.subr.bf16.mxu0 %v811_v26  ;;  %v732_v26 = vld [vmem:[#allocation2 + $0x310] sm:$0xff] }
 0x251   :  { %1087 = vmatpush1.bf16.msra.mxu1 %v684_v32  ;;  %v862_v32 = vld [vmem:[#allocation2 + $0x720] sm:$0xff] }
 0x252   :  { %1005 = vmatpush1.bf16.msra.mxu0 %v810_v30  ;;  %1088 = vmatprep.subr.bf16.mxu1 %v689_v21  ;;  %v737_v30 = vld [vmem:[#allocation2 + $0x338] sm:$0xff]  ;;  %v867_v21 = vld [vmem:[#allocation2 + $0x748] sm:$0xff] }
 0x253   :  { %1006 = vmatprep.subr.bf16.mxu0 %v815_v33  ;;  %v736_v33 = vld [vmem:[#allocation2 + $0x330] sm:$0xff] }
 0x255   :  { %1089 = vmatpush1.bf16.msra.mxu1 %v688_v36  ;;  %v866_v36 = vld [vmem:[#allocation2 + $0x740] sm:$0xff] }
 0x256   :  { %1007 = vmatpush1.bf16.msra.mxu0 %v814_v31  ;;  %1090 = vmatprep.subr.bf16.mxu1 %v693_v45  ;;  %v741_v31 = vld [vmem:[#allocation2 + $0x358] sm:$0xff]  ;;  %v871_v45 = vld [vmem:[#allocation2 + $0x768] sm:$0xff] }
 0x257   :  { %1008 = vmatprep.subr.bf16.mxu0 %v819_v34  ;;  %v740_v34 = vld [vmem:[#allocation2 + $0x350] sm:$0xff] }
 0x259   :  { %1091 = vmatpush1.bf16.msra.mxu1 %v692_v35  ;;  %v870_v35 = vld [vmem:[#allocation2 + $0x760] sm:$0xff] }
 0x25a   :  { %1009 = vmatpush1.bf16.msra.mxu0 %v818_v51  ;;  %1092 = vmatprep.subr.bf16.mxu1 %v697_v38  ;;  %v745_v51 = vld [vmem:[#allocation2 + $0x378] sm:$0xff]  ;;  %v875_v38 = vld [vmem:[#allocation2 + $0x788] sm:$0xff] }
 0x25b   :  { %1010 = vmatprep.subr.bf16.mxu0 %v823_v37  ;;  %v744_v37 = vld [vmem:[#allocation2 + $0x370] sm:$0xff] }
 0x25d   :  { %1093 = vmatpush1.bf16.msra.mxu1 %v696_v40  ;;  %v874_v40 = vld [vmem:[#allocation2 + $0x780] sm:$0xff] }
 0x25e   :  { %1011 = vmatpush1.bf16.msra.mxu0 %v822_v39  ;;  %1103 = vmatprep.subr.bf16.mxu1 %v701_v57  ;;  %v749_v39 = vld [vmem:[#allocation2 + $0x398] sm:$0xff]  ;;  %v879_v57 = vld [vmem:[#allocation2 + $0x7a8] sm:$0xff] }
 0x25f   :  { %1021 = vmatprep.subr.bf16.mxu0 %v827_v41  ;;  %v748_v41 = vld [vmem:[#allocation2 + $0x390] sm:$0xff] }
 0x260   :  { %1095 = vmatmul.mubr.bf16.vlgmr.msra.gmra.mrb[4].mxu1 %v2200_v27  ;;  %v713_v27 = vld [vmem:[#allocation2 + $0x278] sm:$0xff] }
 0x261   :  { %1013 = vmatmul.mubr.bf16.vlgmr.msra.gmra.mrb[8].mxu0 %v2219_v42  ;;  %1104 = vmatpush1.bf16.msra.mxu1 %v700_v46  ;;  %v878_v46 = vld [vmem:[#allocation2 + $0x7a0] sm:$0xff] }
 0x262   :  { %1022 = vmatpush1.bf16.msra.mxu0 %v826_v44  ;;  %1105 = vmatprep.subr.bf16.mxu1 %v705_v49  ;;  %v753_v44 = vld [vmem:[#allocation2 + $0x3b8] sm:$0xff]  ;;  %v883_v49 = vld [vmem:[#allocation2 + $0x7c8] sm:$0xff] }
 0x263   :  { %1023 = vmatprep.subr.bf16.mxu0 %v831_v47  ;;  %1053 = vmatprep.mubr.bf16.mxu0 %v2224_v50  ;;  %v752_v47 = vld [vmem:[#allocation2 + $0x3b0] sm:$0xff] }
 0x264   :  { %1135 = vmatprep.mubr.bf16.mxu1 %v2193_v58  ;;  %v842_v58 = vld [vmem:[#allocation2 + $0x680] sm:$0xff] }
 0x265   :  { %1106 = vmatpush1.bf16.msra.mxu1 %v704_v48  ;;  %v882_v48 = vld [vmem:[#allocation2 + $0x7c0] sm:$0xff] }
 0x266   :  { %1024 = vmatpush1.bf16.msra.mxu0 %v830_v43  ;;  %1107 = vmatprep.subr.bf16.mxu1 %v709_v59  ;;  %v757_v43 = vld [vmem:[#allocation2 + $0x3d8] sm:$0xff]  ;;  %v887_v59 = vld [vmem:[#allocation2 + $0x7e8] sm:$0xff] }
 0x267   :  { %1025 = vmatprep.subr.bf16.mxu0 %v835_v52  ;;  %v756_v52 = vld [vmem:[#allocation2 + $0x3d0] sm:$0xff] }
 0x269   :  { %1108 = vmatpush1.bf16.msra.mxu1 %v708_v56  ;;  %v886_v56 = vld [vmem:[#allocation2 + $0x7e0] sm:$0xff] }
 0x26a   :  { %1026 = vmatpush1.bf16.msra.mxu0 %v834_v54  ;;  %1109 = vmatprep.subr.bf16.mxu1 %v713_v27  ;;  %v761_v54 = vld [vmem:[#allocation2 + $0x3f8] sm:$0xff] }
 0x26b   :  { %1027 = vmatprep.subr.bf16.mxu0 %v839_v61  ;;  %v760_v61 = vld [vmem:[#allocation2 + $0x3f0] sm:$0xff]  ;;  %v765_v27 = vld [vmem:[#allocation2 + $0x418] sm:$0xff] }
 0x26d   :  { %1110 = vmatpush1.bf16.msra.mxu1 %v712_v0  ;;  %v764_v0 = vld [vmem:[#allocation2 + $0x410] sm:$0xff] }
 0x26e   :  { %1028 = vmatpush1.bf16.msra.mxu0 %v838_v63  ;;  %1111 = vmatprep.subr.bf16.mxu1 %v717_v2  ;;  %v2233_v63 = vpack.c.bf16 %v628_v55, %v628_v55  ;;  %v768_v2 = vld [vmem:[#allocation2 + $0x430] sm:$0xff]  ;;  %v777_v55 = vld [vmem:[#allocation2 + $0x478] sm:$0xff] }
 0x26f   :  { %1029 = vmatprep.subr.bf16.mxu0 %v843_v4  ;;  %v769_v4 = vld [vmem:[#allocation2 + $0x438] sm:$0xff] }
 0x271   :  { %1112 = vmatpush1.bf16.msra.mxu1 %v716_v7  ;;  %v776_v7 = vld [vmem:[#allocation2 + $0x470] sm:$0xff] }
 0x272   :  { %1030 = vmatpush1.bf16.msra.mxu0 %v842_v58  ;;  %1113 = vmatprep.subr.bf16.mxu1 %v721_v9  ;;  %v773_v58 = vld [vmem:[#allocation2 + $0x458] sm:$0xff]  ;;  %v780_v9 = vld [vmem:[#allocation2 + $0x490] sm:$0xff] }
 0x273   :  { %1031 = vmatprep.subr.bf16.mxu0 %v847_v8  ;;  %v781_v8 = vld [vmem:[#allocation2 + $0x498] sm:$0xff] }
 0x275   :  { %1114 = vmatpush1.bf16.msra.mxu1 %v720_v11  ;;  %v789_v11 = vld [vmem:[#allocation2 + $0x4d8] sm:$0xff] }
 0x276   :  { %1032 = vmatpush1.bf16.msra.mxu0 %v846_v10  ;;  %1115 = vmatprep.subr.bf16.mxu1 %v725_v13  ;;  %v785_v10 = vld [vmem:[#allocation2 + $0x4b8] sm:$0xff]  ;;  %v792_v13 = vld [vmem:[#allocation2 + $0x4f0] sm:$0xff] }
 0x277   :  { %1033 = vmatprep.subr.bf16.mxu0 %v851_v12  ;;  %v793_v12 = vld [vmem:[#allocation2 + $0x4f8] sm:$0xff] }
 0x279   :  { %1116 = vmatpush1.bf16.msra.mxu1 %v724_v15  ;;  %v796_v15 = vld [vmem:[#allocation2 + $0x510] sm:$0xff] }
 0x27a   :  { %1034 = vmatpush1.bf16.msra.mxu0 %v850_v14  ;;  %1117 = vmatprep.subr.bf16.mxu1 %v729_v18  ;;  %v797_v14 = vld [vmem:[#allocation2 + $0x518] sm:$0xff]  ;;  %v800_v18 = vld [vmem:[#allocation2 + $0x530] sm:$0xff] }
 0x27b   :  { %1035 = vmatprep.subr.bf16.mxu0 %v855_v17  ;;  %v801_v17 = vld [vmem:[#allocation2 + $0x538] sm:$0xff] }
 0x27d   :  { %1118 = vmatpush1.bf16.msra.mxu1 %v728_v20  ;;  %v804_v20 = vld [vmem:[#allocation2 + $0x550] sm:$0xff] }
 0x27e   :  { %1036 = vmatpush1.bf16.msra.mxu0 %v854_v19  ;;  %1119 = vmatprep.subr.bf16.mxu1 %v733_v24  ;;  %v805_v19 = vld [vmem:[#allocation2 + $0x558] sm:$0xff]  ;;  %v808_v24 = vld [vmem:[#allocation2 + $0x570] sm:$0xff] }
 0x27f   :  { %1037 = vmatprep.subr.bf16.mxu0 %v859_v23  ;;  %v809_v23 = vld [vmem:[#allocation2 + $0x578] sm:$0xff] }
 0x281   :  { %1120 = vmatpush1.bf16.msra.mxu1 %v732_v26  ;;  %v812_v26 = vld [vmem:[#allocation2 + $0x590] sm:$0xff] }
 0x282   :  { %1038 = vmatpush1.bf16.msra.mxu0 %v858_v25  ;;  %1121 = vmatprep.subr.bf16.mxu1 %v737_v30  ;;  %v813_v25 = vld [vmem:[#allocation2 + $0x598] sm:$0xff]  ;;  %v816_v30 = vld [vmem:[#allocation2 + $0x5b0] sm:$0xff] }
 0x283   :  { %1039 = vmatprep.subr.bf16.mxu0 %v863_v29  ;;  %v817_v29 = vld [vmem:[#allocation2 + $0x5b8] sm:$0xff] }
 0x285   :  { %1122 = vmatpush1.bf16.msra.mxu1 %v736_v33  ;;  %v820_v33 = vld [vmem:[#allocation2 + $0x5d0] sm:$0xff] }
 0x286   :  { %1040 = vmatpush1.bf16.msra.mxu0 %v862_v32  ;;  %1123 = vmatprep.subr.bf16.mxu1 %v741_v31  ;;  %v821_v32 = vld [vmem:[#allocation2 + $0x5d8] sm:$0xff]  ;;  %v824_v31 = vld [vmem:[#allocation2 + $0x5f0] sm:$0xff] }
 0x287   :  { %1041 = vmatprep.subr.bf16.mxu0 %v867_v21  ;;  %v825_v21 = vld [vmem:[#allocation2 + $0x5f8] sm:$0xff] }
 0x289   :  { %1124 = vmatpush1.bf16.msra.mxu1 %v740_v34  ;;  %v828_v34 = vld [vmem:[#allocation2 + $0x610] sm:$0xff] }
 0x28a   :  { %1042 = vmatpush1.bf16.msra.mxu0 %v866_v36  ;;  %1125 = vmatprep.subr.bf16.mxu1 %v745_v51  ;;  %v829_v36 = vld [vmem:[#allocation2 + $0x618] sm:$0xff]  ;;  %v832_v51 = vld [vmem:[#allocation2 + $0x630] sm:$0xff] }
 0x28b   :  { %1043 = vmatprep.subr.bf16.mxu0 %v871_v45  ;;  %v833_v45 = vld [vmem:[#allocation2 + $0x638] sm:$0xff] }
 0x28d   :  { %1126 = vmatpush1.bf16.msra.mxu1 %v744_v37  ;;  %v836_v37 = vld [vmem:[#allocation2 + $0x650] sm:$0xff] }
 0x28e   :  { %1044 = vmatpush1.bf16.msra.mxu0 %v870_v35  ;;  %1127 = vmatprep.subr.bf16.mxu1 %v749_v39  ;;  %v837_v35 = vld [vmem:[#allocation2 + $0x658] sm:$0xff]  ;;  %v840_v39 = vld [vmem:[#allocation2 + $0x670] sm:$0xff] }
 0x28f   :  { %1045 = vmatprep.subr.bf16.mxu0 %v875_v38  ;;  %v841_v38 = vld [vmem:[#allocation2 + $0x678] sm:$0xff] }
 0x291   :  { %1128 = vmatpush1.bf16.msra.mxu1 %v748_v41  ;;  %v844_v41 = vld [vmem:[#allocation2 + $0x690] sm:$0xff] }
 0x292   :  { %1046 = vmatpush1.bf16.msra.mxu0 %v874_v40  ;;  %1129 = vmatprep.subr.bf16.mxu1 %v753_v44  ;;  %v845_v40 = vld [vmem:[#allocation2 + $0x698] sm:$0xff] }
 0x293   :  { %1047 = vmatprep.subr.bf16.mxu0 %v879_v57  ;;  %v849_v57 = vld [vmem:[#allocation2 + $0x6b8] sm:$0xff] }
 0x295   :  { %1130 = vmatpush1.bf16.msra.mxu1 %v752_v47 }
 0x296   :  { %1048 = vmatpush1.bf16.msra.mxu0 %v878_v46  ;;  %1131 = vmatprep.subr.bf16.mxu1 %v757_v43  ;;  %v852_v43 = vld [vmem:[#allocation2 + $0x6d0] sm:$0xff] }
 0x297   :  { %1049 = vmatprep.subr.bf16.mxu0 %v883_v49 }
 0x299   :  { %1132 = vmatpush1.bf16.msra.mxu1 %v756_v52  ;;  %v856_v52 = vld [vmem:[#allocation2 + $0x6f0] sm:$0xff] }
 0x29a   :  { %1050 = vmatpush1.bf16.msra.mxu0 %v882_v48  ;;  %1133 = vmatprep.subr.bf16.mxu1 %v761_v54  ;;  %v857_v48 = vld [vmem:[#allocation2 + $0x6f8] sm:$0xff]  ;;  %v860_v54 = vld [vmem:[#allocation2 + $0x710] sm:$0xff] }
 0x29b   :  { %1051 = vmatprep.subr.bf16.mxu0 %v887_v59  ;;  %v861_v59 = vld [vmem:[#allocation2 + $0x718] sm:$0xff] }
 0x29d   :  { %1134 = vmatpush1.bf16.msra.mxu1 %v760_v61  ;;  %v864_v61 = vld [vmem:[#allocation2 + $0x730] sm:$0xff] }
 0x29e   :  { %1052 = vmatpush1.bf16.msra.mxu0 %v886_v56  ;;  %1144 = vmatprep.subr.bf16.mxu1 %v765_v27  ;;  %v865_v56 = vld [vmem:[#allocation2 + $0x738] sm:$0xff] }
 0x29f   :  { %v869_v27 = vld [vmem:[#allocation2 + $0x758] sm:$0xff] }
 0x2a0   :  { %1136 = vmatmul.mubr.bf16.vlgmr.msra.gmra.mrb[4].mxu1 %v2205_v28  ;;  %v784_v28 = vld [vmem:[#allocation2 + $0x4b0] sm:$0xff] }
 0x2a1   :  { %1054 = vmatmul.mubr.bf16.vlgmr.msra.gmra.mrb[8].mxu0 %v2233_v63  ;;  %1145 = vmatpush1.bf16.msra.mxu1 %v764_v0  ;;  %v868_v0 = vld [vmem:[#allocation2 + $0x750] sm:$0xff] }
 0x2a2   :  { %1176 = vmatprep.mubr.bf16.mxu1 %v2210_v16  ;;  %1146 = vmatprep.subr.bf16.mxu1 %v769_v4  ;;  %v788_v16 = vld [vmem:[#allocation2 + $0x4d0] sm:$0xff]  ;;  %v873_v4 = vld [vmem:[#allocation2 + $0x778] sm:$0xff] }
 0x2a5   :  { %1147 = vmatpush1.bf16.msra.mxu1 %v768_v2  ;;  %v872_v2 = vld [vmem:[#allocation2 + $0x770] sm:$0xff] }
 0x2a6   :  { %1148 = vmatprep.subr.bf16.mxu1 %v773_v58  ;;  %v877_v58 = vld [vmem:[#allocation2 + $0x798] sm:$0xff] }
 0x2a9   :  { %1149 = vmatpush1.bf16.msra.mxu1 %v772_v53  ;;  %v876_v53 = vld [vmem:[#allocation2 + $0x790] sm:$0xff] }
 0x2aa   :  { %1150 = vmatprep.subr.bf16.mxu1 %v777_v55  ;;  %v881_v55 = vld [vmem:[#allocation2 + $0x7b8] sm:$0xff] }
 0x2ad   :  { %1151 = vmatpush1.bf16.msra.mxu1 %v776_v7  ;;  %v880_v7 = vld [vmem:[#allocation2 + $0x7b0] sm:$0xff] }
 0x2ae   :  { %1152 = vmatprep.subr.bf16.mxu1 %v781_v8  ;;  %v885_v8 = vld [vmem:[#allocation2 + $0x7d8] sm:$0xff] }
 0x2b1   :  { %1153 = vmatpush1.bf16.msra.mxu1 %v780_v9  ;;  %v884_v9 = vld [vmem:[#allocation2 + $0x7d0] sm:$0xff] }
 0x2b2   :  { %1154 = vmatprep.subr.bf16.mxu1 %v785_v10  ;;  %v889_v10 = vld [vmem:[#allocation2 + $0x7f8] sm:$0xff] }
 0x2b5   :  { %1155 = vmatpush1.bf16.msra.mxu1 %v784_v28  ;;  %v888_v28 = vld [vmem:[#allocation2 + $0x7f0] sm:$0xff] }
 0x2b6   :  { %1156 = vmatprep.subr.bf16.mxu1 %v789_v11  ;;  %v1226_v11 = vld [vmem:[%s2299_s5] sm:$0xf] }
 0x2b9   :  { %1157 = vmatpush1.bf16.msra.mxu1 %v788_v16  ;;  %v1252_v16 = vld [vmem:[%s2300_s6] sm:$0xf] }
 0x2ba   :  { %1158 = vmatprep.subr.bf16.mxu1 %v793_v12  ;;  %v1231_v12 = vrot.slane %v1226_v11, %v2154_v60 }
 0x2bd   :  { %1159 = vmatpush1.bf16.msra.mxu1 %v792_v13 }
 0x2be   :  { %1160 = vmatprep.subr.bf16.mxu1 %v797_v14  ;;  %v1235_v14 = vrot.slane %v1226_v11, %v2156_v62 }
 0x2c1   :  { %1161 = vmatpush1.bf16.msra.mxu1 %v796_v15 }
 0x2c2   :  { %1162 = vmatprep.subr.bf16.mxu1 %v801_v17  ;;  %v1257_v17 = vrot.slane %v1252_v16, %v2154_v60 }
 0x2c5   :  { %1163 = vmatpush1.bf16.msra.mxu1 %v800_v18 }
 0x2c6   :  { %1164 = vmatprep.subr.bf16.mxu1 %v805_v19 }
 0x2c9   :  { %1165 = vmatpush1.bf16.msra.mxu1 %v804_v20 }
 0x2ca   :  { %1166 = vmatprep.subr.bf16.mxu1 %v809_v23 }
 0x2cd   :  { %1167 = vmatpush1.bf16.msra.mxu1 %v808_v24 }
 0x2ce   :  { %1168 = vmatprep.subr.bf16.mxu1 %v813_v25 }
 0x2d1   :  { %1169 = vmatpush1.bf16.msra.mxu1 %v812_v26 }
 0x2d2   :  { %1170 = vmatprep.subr.bf16.mxu1 %v817_v29 }
 0x2d5   :  { %1171 = vmatpush1.bf16.msra.mxu1 %v816_v30 }
 0x2d6   :  { %1172 = vmatprep.subr.bf16.mxu1 %v821_v32 }
 0x2d9   :  { %1173 = vmatpush1.bf16.msra.mxu1 %v820_v33  ;;  %v1239_v33 = vrot.slane %v1226_v11, %v2162_v3 }
 0x2da   :  { %1174 = vmatprep.subr.bf16.mxu1 %v825_v21  ;;  %v1243_v21 = vrot.slane %v1226_v11, %v2165_v6 }
 0x2dd   :  { %1175 = vmatpush1.bf16.msra.mxu1 %v824_v31  ;;  %v1265_v31 = vrot.slane %v1252_v16, %v2162_v3 }
 0x2de   :  { %1185 = vmatprep.subr.bf16.mxu1 %v829_v36 }
 0x2e0   :  { %1177 = vmatmul.mubr.bf16.vlgmr.msra.gmra.mrb[4].mxu1 %v2219_v42  ;;  %v848_v42 = vld [vmem:[#allocation2 + $0x6b0] sm:$0xff] }
 0x2e1   :  { %1186 = vmatpush1.bf16.msra.mxu1 %v828_v34  ;;  %1217 = vmatprep.mubr.bf16.mxu1 %v2224_v50  ;;  %v853_v50 = vld [vmem:[#allocation2 + $0x6d8] sm:$0xff]  ;;  %v1269_v34 = vrot.slane %v1252_v16, %v2165_v6 }
 0x2e2   :  { %1187 = vmatprep.subr.bf16.mxu1 %v833_v45 }
 0x2e5   :  { %1188 = vmatpush1.bf16.msra.mxu1 %v832_v51 }
 0x2e6   :  { %1189 = vmatprep.subr.bf16.mxu1 %v837_v35 }
 0x2e9   :  { %1190 = vmatpush1.bf16.msra.mxu1 %v836_v37 }
 0x2ea   :  { %1191 = vmatprep.subr.bf16.mxu1 %v841_v38 }
 0x2ed   :  { %1192 = vmatpush1.bf16.msra.mxu1 %v840_v39 }
 0x2ee   :  { %1193 = vmatprep.subr.bf16.mxu1 %v845_v40 }
 0x2f1   :  { %1194 = vmatpush1.bf16.msra.mxu1 %v844_v41 }
 0x2f2   :  { %1195 = vmatprep.subr.bf16.mxu1 %v849_v57 }
 0x2f3   :  { %v932_v44 = vpop.f32.mrb[0].mxu1 }
 0x2f4   :  { %v934_v46 = vpop.f32.mrb[1].mxu1 }
 0x2f5   :  { %v936_v47 = vpop.f32.mrb[2].mxu1  ;;  %1196 = vmatpush1.bf16.msra.mxu1 %v848_v42 }
 0x2f6   :  { %v937_v49 = vpop.f32.mrb[3].mxu1  ;;  %1197 = vmatprep.subr.bf16.mxu1 %v853_v50 }
 0x2f9   :  { %1198 = vmatpush1.bf16.msra.mxu1 %v852_v43 }
 0x2fa   :  { %1199 = vmatprep.subr.bf16.mxu1 %v857_v48 }
 0x2fd   :  { %1200 = vmatpush1.bf16.msra.mxu1 %v856_v52 }
 0x2fe   :  { %1201 = vmatprep.subr.bf16.mxu1 %v861_v59 }
 0x301   :  { %1202 = vmatpush1.bf16.msra.mxu1 %v860_v54 }
 0x302   :  { %1203 = vmatprep.subr.bf16.mxu1 %v865_v56 }
 0x305   :  { %1204 = vmatpush1.bf16.msra.mxu1 %v864_v61 }
 0x306   :  { %1205 = vmatprep.subr.bf16.mxu1 %v869_v27 }
 0x309   :  { %1206 = vmatpush1.bf16.msra.mxu1 %v868_v0 }
 0x30a   :  { %1207 = vmatprep.subr.bf16.mxu1 %v873_v4 }
 0x30d   :  { %1208 = vmatpush1.bf16.msra.mxu1 %v872_v2 }
 0x30e   :  { %1209 = vmatprep.subr.bf16.mxu1 %v877_v58 }
 0x311   :  { %1210 = vmatpush1.bf16.msra.mxu1 %v876_v53 }
 0x312   :  { %1211 = vmatprep.subr.bf16.mxu1 %v881_v55 }
 0x315   :  { %1212 = vmatpush1.bf16.msra.mxu1 %v880_v7 }
 0x316   :  { %1213 = vmatprep.subr.bf16.mxu1 %v885_v8 }
 0x319   :  { %1214 = vmatpush1.bf16.msra.mxu1 %v884_v9 }
 0x31a   :  { %1215 = vmatprep.subr.bf16.mxu1 %v889_v10 }
 0x31d   :  { %1216 = vmatpush1.bf16.msra.mxu1 %v888_v28 }
 0x320   :  { %1218 = vmatmul.mubr.bf16.vlgmr.msra.gmra.mrb[4].mxu1 %v2233_v63  ;;  %v1261_v63 = vrot.slane %v1252_v16, %v2156_v62 }
 0x374   :  { %v1055_v13 = vpop.f32.mrb[8].mxu0 }
 0x375   :  { %v1780_v15 = vadd.f32 %v1055_v13, %v932_v44  ;;  %v1057_v18 = vpop.f32.mrb[9].mxu0 }
 0x376   :  { %v1781_v19 = vadd.f32 %v1057_v18, %v934_v46  ;;  %v1059_v20 = vpop.f32.mrb[10].mxu0 }
 0x377   :  { %v1248_v23 = vmul.f32 %v1780_v15, %v1231_v12  ;;  %v1060_v24 = vpop.f32.mrb[11].mxu0 }
 0x378   :  { %v1249_v25 = vmul.f32 %v1781_v19, %v1235_v14 }
 0x379   :  { %v2251_v26 = vadd.f32 %v1257_v17, %v1248_v23 }
 0x37a   :  { %v1275_v29 = vadd.f32 %v1261_v63, %v1249_v25 }
 0x37b   :  { %v1278_v30 = vmax.f32 %v2251_v26, 0.0 }
 0x37c   :  { %v1279_v32 = vmax.f32 %v1275_v29, 0.0 }
 0x3f3   :  { %v1219_v36 = vpop.f32.mrb[4].mxu1 }
 0x3f4   :  { %v1250_v45 = vmul.f32 %v1239_v33, %v1219_v36  ;;  %v1221_v51 = vpop.f32.mrb[5].mxu1 }
 0x3f5   :  { %v1251_v35 = vmul.f32 %v1243_v21, %v1221_v51  ;;  %v1223_v37 = vpop.f32.mrb[6].mxu1 }
 0x3f6   :  { %v2258_v38 = vadd.f32 %v1265_v31, %v1250_v45  ;;  %v1224_v39 = vpop.f32.mrb[7].mxu1 }
 0x3f7   :  { %v2260_v40 = vadd.f32 %v1269_v34, %v1251_v35 }
 0x3f8   :  { %v1280_v41 = vmax.f32 %v2258_v38, 0.0 }
 0x3f9   :  { %v1281_v57 = vmax.f32 %v2260_v40, 0.0 }
 0x3fa   :  { %1966 = dma.done.wait [#allocation4 + $0x1], 8192 }
 0x3fb   :  { %1967 = vsyncadd [#allocation4 + $0x1], 4294959104  ;;  %v1351_v42 = vpack.c.bf16 %v1279_v32, %v1279_v32  ;;  %1843 = vset.pattern.permute.xlu1 %v1977_v1  ;;  %1845 = vset.pattern.permute.xlu0 %v1989_v5  ;;  %v1287_v3 = vld [vmem:[#allocation3 + $0x8] sm:$0xff]  ;;  %v1286_v6 = vld [vmem:[#allocation3] sm:$0xff]  ;;  %v1350_v21 = vpack.c.bf16 %v1278_v30, %v1278_v30  ;;  %v1353_v31 = vpack.c.bf16 %v1281_v57, %v1281_v57  ;;  %s1994_s19 = smov 127   ;;  %s1995_s21 = smov 1  }
 0x3fc   :  { %v1289_v44 = vld [vmem:[#allocation3 + $0x18] sm:$0xff]  ;;  %1354 = vmatprep.subr.bf16.mxu0 %v1287_v3  ;;  %v1288_v50 = vld [vmem:[#allocation3 + $0x10] sm:$0xff]  ;;  %v1291_v46 = vld [vmem:[#allocation3 + $0x28] sm:$0xff]  ;;  %vm1673_vm9 = vcmp.eq.s32.totalorder %v2129_v22, 1  ;;  %vm1672_vm10 = vcmp.eq.s32.totalorder %v2129_v22, 0 }
 0x3fd   :  { %1386 = vmatprep.mubr.bf16.mxu0 %v1351_v42  ;;  %1355 = vmatpush1.bf16.msra.mxu0 %v1286_v6  ;;  %v1290_v47 = vld [vmem:[#allocation3 + $0x20] sm:$0xff]  ;;  %v1293_v49 = vld [vmem:[#allocation3 + $0x38] sm:$0xff]  ;;  %v1292_v43 = vld [vmem:[#allocation3 + $0x30] sm:$0xff] }
 0x3fe   :  { %1356 = vmatprep.subr.bf16.mxu0 %v1289_v44  ;;  %v1295_v48 = vld [vmem:[#allocation3 + $0x48] sm:$0xff]  ;;  %v1294_v1 = vld [vmem:[#allocation3 + $0x40] sm:$0xff]  ;;  %v1297_v52 = vld [vmem:[#allocation3 + $0x58] sm:$0xff] }
 0x3ff   :  { %v1296_v59 = vld [vmem:[#allocation3 + $0x50] sm:$0xff]  ;;  %v1299_v54 = vld [vmem:[#allocation3 + $0x68] sm:$0xff]  ;;  %v1298_v56 = vld [vmem:[#allocation3 + $0x60] sm:$0xff] }
 0x400   :  { %v1301_v61 = vld [vmem:[#allocation3 + $0x78] sm:$0xff]  ;;  %v1846_v27 = vld [vmem:[#allocation10 + $0x40] sm:$0xff]   ;;  %v1850_v58 = vld [vmem:[#allocation10 + $0x50] sm:$0xff]  }
 0x401   :  { %1357 = vmatpush1.bf16.msra.mxu0 %v1288_v50  ;;  %v1847_v0 = vld [vmem:[#allocation10] sm:$0xff]   ;;  %1742 = vmatprep.subr.bf16.mxu1 %v1846_v27  ;;  %v1848_v4 = vld [vmem:[#allocation10 + $0x48] sm:$0xff]   ;;  %v1303_v55 = vld [vmem:[#allocation3 + $0x88] sm:$0xff] }
 0x402   :  { %1358 = vmatprep.subr.bf16.mxu0 %v1291_v46  ;;  %1743 = vmatpush3.bf16.msra.mxu1 %v1847_v0  ;;  %v1849_v2 = vld [vmem:[#allocation10 + $0x8] sm:$0xff]   ;;  %v1300_v53 = vld [vmem:[#allocation3 + $0x70] sm:$0xff]  ;;  %v1302_v7 = vld [vmem:[#allocation3 + $0x80] sm:$0xff] }
 0x403   :  { %1744 = vmatprep.subr.bf16.mxu1 %v1848_v4  ;;  %v1851_v8 = vld [vmem:[#allocation10 + $0x10] sm:$0xff]   ;;  %v1305_v9 = vld [vmem:[#allocation3 + $0x98] sm:$0xff]  ;;  %v1852_v10 = vld [vmem:[#allocation10 + $0x58] sm:$0xff]  }
 0x404   :  { %v1853_v28 = vld [vmem:[#allocation10 + $0x18] sm:$0xff]   ;;  %v1854_v11 = vld [vmem:[#allocation10 + $0x60] sm:$0xff]   ;;  %v1856_v14 = vld [vmem:[#allocation10 + $0x68] sm:$0xff]  }
 0x405   :  { %1359 = vmatpush1.bf16.msra.mxu0 %v1290_v47  ;;  %v1304_v16 = vld [vmem:[#allocation3 + $0x90] sm:$0xff]  ;;  %v1307_v12 = vld [vmem:[#allocation3 + $0xa8] sm:$0xff]  ;;  %v1306_v15 = vld [vmem:[#allocation3 + $0xa0] sm:$0xff] }
 0x406   :  { %1360 = vmatprep.subr.bf16.mxu0 %v1293_v49  ;;  %1745 = vmatpush3.bf16.msra.mxu1 %v1849_v2  ;;  %v1855_v13 = vld [vmem:[#allocation10 + $0x20] sm:$0xff]   ;;  %v1309_v17 = vld [vmem:[#allocation3 + $0xb8] sm:$0xff]  ;;  %v1311_v19 = vld [vmem:[#allocation3 + $0xc8] sm:$0xff] }
 0x407   :  { %1746 = vmatprep.subr.bf16.mxu1 %v1850_v58  ;;  %v1308_v18 = vld [vmem:[#allocation3 + $0xb0] sm:$0xff]  ;;  %v1310_v63 = vld [vmem:[#allocation3 + $0xc0] sm:$0xff]  ;;  %v1313_v20 = vld [vmem:[#allocation3 + $0xd8] sm:$0xff]  ;;  %v1352_v58 = vpack.c.bf16 %v1280_v41, %v1280_v41 }
 0x408   :  { %v1312_v23 = vld [vmem:[#allocation3 + $0xd0] sm:$0xff]  ;;  %v1315_v24 = vld [vmem:[#allocation3 + $0xe8] sm:$0xff]  ;;  %v1314_v25 = vld [vmem:[#allocation3 + $0xe0] sm:$0xff] }
 0x409   :  { %1361 = vmatpush1.bf16.msra.mxu0 %v1292_v43  ;;  %v1317_v29 = vld [vmem:[#allocation3 + $0xf8] sm:$0xff]  ;;  %v1316_v32 = vld [vmem:[#allocation3 + $0xf0] sm:$0xff]  ;;  %v1319_v33 = vld [vmem:[#allocation3 + $0x108] sm:$0xff] }
 0x40a   :  { %1362 = vmatprep.subr.bf16.mxu0 %v1295_v48  ;;  %1747 = vmatpush3.bf16.msra.mxu1 %v1851_v8  ;;  %v1318_v36 = vld [vmem:[#allocation3 + $0x100] sm:$0xff]  ;;  %v1321_v34 = vld [vmem:[#allocation3 + $0x118] sm:$0xff]  ;;  %v1320_v45 = vld [vmem:[#allocation3 + $0x110] sm:$0xff] }
 0x40b   :  { %1748 = vmatprep.subr.bf16.mxu1 %v1852_v10  ;;  %v1323_v51 = vld [vmem:[#allocation3 + $0x128] sm:$0xff]  ;;  %v1322_v35 = vld [vmem:[#allocation3 + $0x120] sm:$0xff]  ;;  %v1325_v26 = vld [vmem:[#allocation3 + $0x138] sm:$0xff] }
 0x40c   :  { %v1324_v30 = vld [vmem:[#allocation3 + $0x130] sm:$0xff]  ;;  %v1327_v37 = vld [vmem:[#allocation3 + $0x148] sm:$0xff]  ;;  %v1326_v39 = vld [vmem:[#allocation3 + $0x140] sm:$0xff] }
 0x40d   :  { %1363 = vmatpush1.bf16.msra.mxu0 %v1294_v1  ;;  %v1329_v40 = vld [vmem:[#allocation3 + $0x158] sm:$0xff]  ;;  %v1328_v57 = vld [vmem:[#allocation3 + $0x150] sm:$0xff]  ;;  %v1331_v42 = vld [vmem:[#allocation3 + $0x168] sm:$0xff] }
 0x40e   :  { %1364 = vmatprep.subr.bf16.mxu0 %v1297_v52  ;;  %1749 = vmatpush3.bf16.msra.mxu1 %v1853_v28  ;;  %v1330_v3 = vld [vmem:[#allocation3 + $0x160] sm:$0xff]  ;;  %v1333_v6 = vld [vmem:[#allocation3 + $0x178] sm:$0xff]  ;;  %v1332_v44 = vld [vmem:[#allocation3 + $0x170] sm:$0xff] }
 0x40f   :  { %1750 = vmatprep.subr.bf16.mxu1 %v1854_v11  ;;  %v1335_v50 = vld [vmem:[#allocation3 + $0x188] sm:$0xff]  ;;  %v1334_v46 = vld [vmem:[#allocation3 + $0x180] sm:$0xff]  ;;  %v1337_v47 = vld [vmem:[#allocation3 + $0x198] sm:$0xff] }
 0x410   :  { %v1336_v49 = vld [vmem:[#allocation3 + $0x190] sm:$0xff]  ;;  %v1339_v43 = vld [vmem:[#allocation3 + $0x1a8] sm:$0xff]  ;;  %v1338_v48 = vld [vmem:[#allocation3 + $0x1a0] sm:$0xff] }
 0x411   :  { %1365 = vmatpush1.bf16.msra.mxu0 %v1296_v59  ;;  %v1341_v1 = vld [vmem:[#allocation3 + $0x1b8] sm:$0xff]  ;;  %v1340_v52 = vld [vmem:[#allocation3 + $0x1b0] sm:$0xff]  ;;  %v1343_v59 = vld [vmem:[#allocation3 + $0x1c8] sm:$0xff] }
 0x412   :  { %1366 = vmatprep.subr.bf16.mxu0 %v1299_v54  ;;  %1751 = vmatpush3.bf16.msra.mxu1 %v1855_v13  ;;  %v1342_v54 = vld [vmem:[#allocation3 + $0x1c0] sm:$0xff]  ;;  %v1347_v27 = vld [vmem:[#allocation3 + $0x1e8] sm:$0xff]  ;;  %v1349_v4 = vld [vmem:[#allocation3 + $0x1f8] sm:$0xff] }
 0x413   :  { %1752 = vmatprep.subr.bf16.mxu1 %v1856_v14  ;;  %v1346_v0 = vld [vmem:[#allocation3 + $0x1e0] sm:$0xff]  ;;  %v1348_v2 = vld [vmem:[#allocation3 + $0x1f0] sm:$0xff]  ;;  %v1860_v8 = vld [vmem:[#allocation10 + $0x78] sm:$0xff]  }
 0x414   :  { %v1436_v10 = vld [vmem:[%s2302_s8] sm:$0x3] }
 0x415   :  { %1367 = vmatpush1.bf16.msra.mxu0 %v1298_v56  ;;  %v1345_v56 = vld [vmem:[#allocation3 + $0x1d8] sm:$0xff]  ;;  %v1450_v38 = vld [vmem:[%s2303_s9] sm:$0x3]  ;;  %v1441_v41 = vrot.slane %v1436_v10, %v2154_v60  ;;  %v1445_v28 = vrot.slane %v1436_v10, %v2156_v62 }
 0x416   :  { %1368 = vmatprep.subr.bf16.mxu0 %v1301_v61  ;;  %v1344_v61 = vld [vmem:[#allocation3 + $0x1d0] sm:$0xff]  ;;  %v1455_v11 = vrot.slane %v1450_v38, %v2154_v60  ;;  %v1723_v60 = vld [vmem:[%s2305_s11] ss:$0 sm:$0xff] }
 0x419   :  { %1369 = vmatpush1.bf16.msra.mxu0 %v1300_v53  ;;  %v1857_v53 = vld [vmem:[#allocation10 + $0x28] sm:$0xff]  }
 0x41a   :  { %1370 = vmatprep.subr.bf16.mxu0 %v1303_v55  ;;  %1753 = vmatpush3.bf16.msra.mxu1 %v1857_v53  ;;  %v1858_v55 = vld [vmem:[#allocation10 + $0x70] sm:$0xff]  }
 0x41b   :  { %1754 = vmatprep.subr.bf16.mxu1 %v1858_v55 }
 0x41d   :  { %1371 = vmatpush1.bf16.msra.mxu0 %v1302_v7  ;;  %v1859_v7 = vld [vmem:[#allocation10 + $0x30] sm:$0xff]  }
 0x41e   :  { %1372 = vmatprep.subr.bf16.mxu0 %v1305_v9  ;;  %1755 = vmatpush3.bf16.msra.mxu1 %v1859_v7  ;;  %v1861_v9 = vld [vmem:[#allocation10 + $0x38] sm:$0xff]  }
 0x41f   :  { %1756 = vmatprep.subr.bf16.mxu1 %v1860_v8 }
 0x421   :  { %1373 = vmatpush1.bf16.msra.mxu0 %v1304_v16 }
 0x422   :  { %1374 = vmatprep.subr.bf16.mxu0 %v1307_v12  ;;  %1757 = vmatpush3.bf16.msra.mxu1 %v1861_v9  ;;  %v1459_v12 = vrot.slane %v1450_v38, %v2156_v62 }
 0x425   :  { %1375 = vmatpush1.bf16.msra.mxu0 %v1306_v15 }
 0x426   :  { %1376 = vmatprep.subr.bf16.mxu0 %v1309_v17 }
 0x429   :  { %1377 = vmatpush1.bf16.msra.mxu0 %v1308_v18 }
 0x42a   :  { %1378 = vmatprep.subr.bf16.mxu0 %v1311_v19 }
 0x42d   :  { %1379 = vmatpush1.bf16.msra.mxu0 %v1310_v63 }
 0x42e   :  { %1380 = vmatprep.subr.bf16.mxu0 %v1313_v20 }
 0x431   :  { %1381 = vmatpush1.bf16.msra.mxu0 %v1312_v23 }
 0x432   :  { %1382 = vmatprep.subr.bf16.mxu0 %v1315_v24 }
 0x435   :  { %1383 = vmatpush1.bf16.msra.mxu0 %v1314_v25 }
 0x436   :  { %1384 = vmatprep.subr.bf16.mxu0 %v1317_v29 }
 0x439   :  { %1385 = vmatpush1.bf16.msra.mxu0 %v1316_v32 }
 0x43a   :  { %1395 = vmatprep.subr.bf16.mxu0 %v1319_v33 }
 0x43c   :  { %1387 = vmatmul.mubr.bf16.vlgmr.msra.gmra.mrb[12].mxu0 %v1350_v21 }
 0x43d   :  { %1396 = vmatpush1.bf16.msra.mxu0 %v1318_v36  ;;  %1427 = vmatprep.mubr.bf16.mxu0 %v1353_v31 }
 0x43e   :  { %1397 = vmatprep.subr.bf16.mxu0 %v1321_v34 }
 0x441   :  { %1398 = vmatpush1.bf16.msra.mxu0 %v1320_v45 }
 0x442   :  { %1399 = vmatprep.subr.bf16.mxu0 %v1323_v51 }
 0x445   :  { %1400 = vmatpush1.bf16.msra.mxu0 %v1322_v35 }
 0x446   :  { %1401 = vmatprep.subr.bf16.mxu0 %v1325_v26 }
 0x449   :  { %1402 = vmatpush1.bf16.msra.mxu0 %v1324_v30 }
 0x44a   :  { %1403 = vmatprep.subr.bf16.mxu0 %v1327_v37 }
 0x44d   :  { %1404 = vmatpush1.bf16.msra.mxu0 %v1326_v39 }
 0x44e   :  { %1405 = vmatprep.subr.bf16.mxu0 %v1329_v40 }
 0x451   :  { %1406 = vmatpush1.bf16.msra.mxu0 %v1328_v57 }
 0x452   :  { %1407 = vmatprep.subr.bf16.mxu0 %v1331_v42 }
 0x455   :  { %1408 = vmatpush1.bf16.msra.mxu0 %v1330_v3 }
 0x456   :  { %1409 = vmatprep.subr.bf16.mxu0 %v1333_v6 }
 0x459   :  { %1410 = vmatpush1.bf16.msra.mxu0 %v1332_v44 }
 0x45a   :  { %1411 = vmatprep.subr.bf16.mxu0 %v1335_v50 }
 0x45d   :  { %1412 = vmatpush1.bf16.msra.mxu0 %v1334_v46 }
 0x45e   :  { %1413 = vmatprep.subr.bf16.mxu0 %v1337_v47 }
 0x461   :  { %1414 = vmatpush1.bf16.msra.mxu0 %v1336_v49 }
 0x462   :  { %1415 = vmatprep.subr.bf16.mxu0 %v1339_v43 }
 0x465   :  { %1416 = vmatpush1.bf16.msra.mxu0 %v1338_v48 }
 0x466   :  { %1417 = vmatprep.subr.bf16.mxu0 %v1341_v1 }
 0x469   :  { %1418 = vmatpush1.bf16.msra.mxu0 %v1340_v52 }
 0x46a   :  { %1419 = vmatprep.subr.bf16.mxu0 %v1343_v59 }
 0x46d   :  { %1420 = vmatpush1.bf16.msra.mxu0 %v1342_v54 }
 0x46e   :  { %1421 = vmatprep.subr.bf16.mxu0 %v1345_v56 }
 0x471   :  { %1422 = vmatpush1.bf16.msra.mxu0 %v1344_v61 }
 0x472   :  { %1423 = vmatprep.subr.bf16.mxu0 %v1347_v27 }
 0x475   :  { %1424 = vmatpush1.bf16.msra.mxu0 %v1346_v0 }
 0x476   :  { %1425 = vmatprep.subr.bf16.mxu0 %v1349_v4 }
 0x479   :  { %1426 = vmatpush1.bf16.msra.mxu0 %v1348_v2 }
 0x47c   :  { %1428 = vmatmul.mubr.bf16.vlgmr.msra.gmra.mrb[12].mxu0 %v1352_v58 }
 0x54f   :  { %v1429_v16 = vpop.f32.mrb[12].mxu0 }
 0x550   :  { %v1448_v13 = vmul.f32 %v1441_v41, %v1429_v16  ;;  %v1431_v14 = vpop.f32.mrb[13].mxu0 }
 0x551   :  { %v1449_v15 = vmul.f32 %v1445_v28, %v1431_v14  ;;  %v1433_v17 = vpop.f32.mrb[14].mxu0 }
 0x552   :  { %v1462_v18 = vadd.f32 %v1455_v11, %v1448_v13  ;;  %v1434_v19 = vpop.f32.mrb[15].mxu0 }
 0x553   :  { %v1463_v63 = vadd.f32 %v1459_v12, %v1449_v15 }
 0x554   :  { %v1464_v20 = vmax.f32 %v1462_v18, 0.0 }
 0x555   :  { %v1465_v23 = vmax.f32 %v1463_v63, 0.0 }
 0x556   :  { %v1466_v25 = vpack.c.bf16 %v1464_v20, %v1464_v20 }
 0x557   :  { %v1467_v24 = vpack.c.bf16 %v1465_v23, %v1465_v23 }
 0x559   :  { %1635 = vmatprep.mubr.bf16.mxu1 %v1467_v24 }
 0x55a   :  { %1636 = vmatmul.mubr.bf16.vlgmr.msra.gmra.mrb[8].mxu1 %v1466_v25 }
 0x62d   :  { %v1758_v29 = vpop.f32.mrb[8].mxu1 }
 0x62e   :  { %v1759_v32 = vpop.f32.mrb[9].mxu1 }
 0x62f   :  { %v1760_v62 = vadd.f32 %v1759_v32, %v1758_v29  ;;  %v1761_v33 = vpop.f32.mrb[10].mxu1 }
 0x630   :  { %v1762_v21 = vpop.f32.mrb[11].mxu1 }
 0x631   :  { %v1638_v31 = vadd.f32 %v1760_v62, %v1723_v60 }
 0x633   :  { %1658 = vrot.lane.b32.xlu0 %v1638_v31, %s1994_s19 }
 0x637   :  { %1644 = vrot.lane.b32.xlu0 %v1638_v31, %s1995_s21 }
 0x6a5   :  { %v1659_v36 = vpop.permute.xlu0 %1658 }
 0x6a6   :  { %v1661_v34 = vsub.f32 %v1638_v31, %v1659_v36 }
 0x6a8   :  { %v1663_v45 = vand.u32 2147483647, %v1661_v34  ;;  %v1662_v50 = vmax.f32 %v1661_v34, 0.0 }
 0x6a9   :  { %v1645_v51 = vpop.permute.xlu0 %1644 }
 0x6aa   :  { %v1664_v35 = vsub.f32 0.0, %v1663_v45  ;;  %v1647_v26 = vsub.f32 %v1638_v31, %v1645_v51 }
 0x6ac   :  { %v1665_v30 = vmul.f32 1.442695, %v1664_v35  ;;  %v1649_v37 = vand.u32 2147483647, %v1647_v26  ;;  %v1648_v43 = vmax.f32 %v1647_v26, 0.0 }
 0x6ae   :  { %1862 = vpow2.f32 %v1665_v30  ;;  %v1650_v39 = vsub.f32 0.0, %v1649_v37 }
 0x6b0   :  { %v1651_v40 = vmul.f32 1.442695, %v1650_v39 }
 0x6b2   :  { %1864 = vpow2.f32 %v1651_v40 }
 0x6b8   :  { %v1863_v57 = vpop.eup %1862 }
 0x6b9   :  { %v1667_v42 = vadd.f32 1.0, %v1863_v57 }
 0x6bb   :  { %1866 = vlog2.f32 %v1667_v42 }
 0x6bc   :  { %v1865_v3 = vpop.eup %1864 }
 0x6bd   :  { %v1653_v6 = vadd.f32 1.0, %v1865_v3 }
 0x6bf   :  { %1868 = vlog2.f32 %v1653_v6 }
 0x6c5   :  { %v1867_v44 = vpop.eup %1866 }
 0x6c6   :  { %v1669_v46 = vmul.f32 0.6931472, %v1867_v44 }
 0x6c8   :  { %v1670_v47 = vadd.f32 %v1669_v46, %v1662_v50 }
 0x6c9   :  { %v1869_v49 = vpop.eup %1868 }
 0x6ca   :  { %v1671_v48 = vsub.f32 0.0, %v1670_v47  ;;  %v1655_v1 = vmul.f32 0.6931472, %v1869_v49 }
 0x6cc   :  { %1676 = vperm.xlu1 %1843, %v1671_v48   ;;  %v1656_v52 = vadd.f32 %v1655_v1, %v1648_v43 }
 0x6ce   :  { %v1657_v59 = vsub.f32 0.0, %v1656_v52 }
 0x6d0   :  { %1844 = vset.pattern.permute.xlu1 %v1989_v5 }
 0x6d1   :  { %1682 = vperm.xlu1 %1844, %v1657_v59  }
 0x74b   :  { %v1677_v54 = vpop.permute.xlu1 %1676 }
 0x74c   :  { %v1679_v56 = vsel %vm1673_vm9, %v1677_v54, 0.0 }
 0x750   :  { %v1683_v61 = vpop.permute.xlu1 %1682 }
 0x751   :  { %v1685_v27 = vsel %vm1672_vm10, %v1683_v61, %v1679_v56 }
 0x752   :  { %1686 = vst [vmem:[%s2306_s12] sm:$0xff] %v1685_v27 }
 0x753   :  { %1691 = vsyncpa [#allocation6], 1 }
 0x754   :  { %1692 = vsyncpa [#allocation8], 1 }
 0x755   :  { %1693 = vsyncpa [#allocation11], 1 }
 0x756   :  { %1694 = vsyncmov [#allocation4] }
 0x759   :  { %s1695_s23 = vpop.sfrf %1694 }
 0x75a   :  { %p1740_p4 = scmp.ne.s32.totalorder %s1695_s23, 0 }
 0x75c   :  { %1699 = shalt.err (%p1740_p4)  }
 0x75d   :  { %1701 = vsyncmov [#allocation4 + $0x1] }
 0x760   :  { %s1702_s0 = vpop.sfrf %1701 }
 0x761   :  { %p1741_p5 = scmp.ne.s32.totalorder %s1702_s0, 0 }
 0x763   :  { %1706 = shalt.err (%p1741_p5)  }

</bundles_post_ra>
